<compile_context>
chip_gen: v5e
topology: v5e:2x2
jax: 0.10.0
libtpu: 0.0.40
codegen_flags: <defaults>
</compile_context>

<pallas_src>
import functools

import jax
import jax.numpy as jnp
from jax import lax
from jax.experimental import pallas as pl
from jax.experimental.pallas import tpu as pltpu


F32 = jnp.float32
COMPUTE_DTYPE = jnp.bfloat16
_VMEM_LIMIT = 64 * 1024 * 1024
_LN_EPS = 1e-6


# ----------------------------- tiling helpers --------------------------------

def _tile_m(m, pref=256):
    return m if m <= pref else pref


def _tile_n(n, pref=512):
    return n if n <= pref else pref


def _tile_k(k, pref=512):
    # K tiles must divide K exactly (partial K blocks would add garbage to the acc).
    if k <= pref:
        return k
    for t in (pref, 256, 128):
        if k % t == 0:
            return t
    return k


# ----------------------------- Pallas kernels --------------------------------

def _matmul_bias(x, w, b, residual=None, out_dtype=None):
    """y = x @ w + b (+ residual).  x:(M,K) bf16, w:(K,N) bf16, b:(N,) f32.

    Tiled over (M, N) with a K reduction grid axis and a f32 VMEM accumulator.
    Bias add and residual add are done in the epilogue (last K step)."""
    M, K = x.shape
    N = w.shape[1]
    out_dtype = out_dtype or x.dtype
    tm, tn, tk = _tile_m(M), _tile_n(N), _tile_k(K)
    grid = (pl.cdiv(M, tm), pl.cdiv(N, tn), K // tk)
    b2 = b.reshape(1, N).astype(F32)

    def kernel_res(x_ref, w_ref, b_ref, r_ref, o_ref, acc_ref):
        @pl.when(pl.program_id(2) == 0)
        def _():
            acc_ref[...] = jnp.zeros_like(acc_ref)

        acc_ref[...] += jnp.dot(x_ref[...], w_ref[...],
                                preferred_element_type=jnp.float32)

        @pl.when(pl.program_id(2) == pl.num_programs(2) - 1)
        def _():
            out = acc_ref[...] + b_ref[...] + r_ref[...].astype(jnp.float32)
            o_ref[...] = out.astype(o_ref.dtype)

    def kernel_nores(x_ref, w_ref, b_ref, o_ref, acc_ref):
        @pl.when(pl.program_id(2) == 0)
        def _():
            acc_ref[...] = jnp.zeros_like(acc_ref)

        acc_ref[...] += jnp.dot(x_ref[...], w_ref[...],
                                preferred_element_type=jnp.float32)

        @pl.when(pl.program_id(2) == pl.num_programs(2) - 1)
        def _():
            o_ref[...] = (acc_ref[...] + b_ref[...]).astype(o_ref.dtype)

    in_specs = [
        pl.BlockSpec((tm, tk), lambda i, j, k: (i, k)),
        pl.BlockSpec((tk, tn), lambda i, j, k: (k, j)),
        pl.BlockSpec((1, tn), lambda i, j, k: (0, j)),
    ]
    args = [x, w, b2]
    if residual is not None:
        in_specs.append(pl.BlockSpec((tm, tn), lambda i, j, k: (i, j)))
        args.append(residual)
        kernel = kernel_res
    else:
        kernel = kernel_nores

    return pl.pallas_call(
        kernel,
        out_shape=jax.ShapeDtypeStruct((M, N), out_dtype),
        grid=grid,
        in_specs=in_specs,
        out_specs=pl.BlockSpec((tm, tn), lambda i, j, k: (i, j)),
        scratch_shapes=[pltpu.VMEM((tm, tn), jnp.float32)],
        compiler_params=pltpu.CompilerParams(
            dimension_semantics=("parallel", "parallel", "arbitrary"),
            vmem_limit_bytes=_VMEM_LIMIT),
    )(*args)


def _ln_matmul(x, ln_w, ln_b, w, b, out_dtype=None):
    """y = (LayerNorm(x) * ln_w + ln_b) @ w + b.  x:(M,D) bf16, w:(D,N) bf16.

    LN statistics are computed in f32 inside the kernel; the normalized tile is
    cast to bf16 right before the MXU.  D (the contraction dim) stays whole so
    the LN sees full rows; grid tiles M and N."""
    M, D = x.shape
    N = w.shape[1]
    out_dtype = out_dtype or x.dtype
    tm, tn = _tile_m(M), _tile_n(N)
    grid = (pl.cdiv(M, tm), pl.cdiv(N, tn))
    ln_w2 = ln_w.reshape(1, D).astype(F32)
    ln_b2 = ln_b.reshape(1, D).astype(F32)
    b2 = b.reshape(1, N).astype(F32)

    def kernel(x_ref, g_ref, bln_ref, w_ref, b_ref, o_ref):
        xv = x_ref[...].astype(jnp.float32)
        mean = jnp.mean(xv, axis=-1, keepdims=True)
        var = jnp.mean(jnp.square(xv - mean), axis=-1, keepdims=True)
        h = (xv - mean) * lax.rsqrt(var + _LN_EPS)
        h = h * g_ref[...] + bln_ref[...]
        y = jnp.dot(h.astype(w_ref.dtype), w_ref[...],
                    preferred_element_type=jnp.float32)
        o_ref[...] = (y + b_ref[...]).astype(o_ref.dtype)

    return pl.pallas_call(
        kernel,
        out_shape=jax.ShapeDtypeStruct((M, N), out_dtype),
        grid=grid,
        in_specs=[
            pl.BlockSpec((tm, D), lambda i, j: (i, 0)),
            pl.BlockSpec((1, D), lambda i, j: (0, 0)),
            pl.BlockSpec((1, D), lambda i, j: (0, 0)),
            pl.BlockSpec((D, tn), lambda i, j: (0, j)),
            pl.BlockSpec((1, tn), lambda i, j: (0, j)),
        ],
        out_specs=pl.BlockSpec((tm, tn), lambda i, j: (i, j)),
        compiler_params=pltpu.CompilerParams(
            dimension_semantics=("parallel", "parallel"),
            vmem_limit_bytes=_VMEM_LIMIT),
    )(x, ln_w2, ln_b2, w, b2)


def _swiglu_ln(z, ln_w, ln_b, out_dtype=None):
    """SwiGLU gate + inner LayerNorm: LN(silu(z[:, :H]) * z[:, H:]).  z:(M, 2H)."""
    M, H2 = z.shape
    H = H2 // 2
    out_dtype = out_dtype or z.dtype
    tm = _tile_m(M, pref=512)
    grid = (pl.cdiv(M, tm),)
    ln_w2 = ln_w.reshape(1, H).astype(F32)
    ln_b2 = ln_b.reshape(1, H).astype(F32)

    def kernel(z_ref, g_ref, b_ref, o_ref):
        zv = z_ref[...].astype(jnp.float32)
        gate = zv[:, :H]
        up = zv[:, H:]
        m = (gate * jax.nn.sigmoid(gate)) * up
        mean = jnp.mean(m, axis=-1, keepdims=True)
        var = jnp.mean(jnp.square(m - mean), axis=-1, keepdims=True)
        y = (m - mean) * lax.rsqrt(var + _LN_EPS)
        o_ref[...] = (y * g_ref[...] + b_ref[...]).astype(o_ref.dtype)

    return pl.pallas_call(
        kernel,
        out_shape=jax.ShapeDtypeStruct((M, H), out_dtype),
        grid=grid,
        in_specs=[
            pl.BlockSpec((tm, H2), lambda i: (i, 0)),
            pl.BlockSpec((1, H), lambda i: (0, 0)),
            pl.BlockSpec((1, H), lambda i: (0, 0)),
        ],
        out_specs=pl.BlockSpec((tm, H), lambda i: (i, 0)),
        compiler_params=pltpu.CompilerParams(
            dimension_semantics=("parallel",),
            vmem_limit_bytes=_VMEM_LIMIT),
    )(z, ln_w2, ln_b2)


def _attention(qkv, rope, num_heads):
    """Multi-head attention with in-kernel rotary embedding.

    qkv : (B, N, 3D) token-major fused projection output (q | k | v columns,
          q already scaled; q/k head columns pre-permuted to even/odd order so the
          NeoX half-rotation used here equals timm's interleaved rope).
    rope: (N, 2*Dh) f32 = [sin | cos] in NeoX layout, row 0 (cls) = identity.

    One grid step per batch element; a static loop covers all heads, so the
    output store is a lane-dense (N, D) slab and no HBM transpose is needed."""
    B, N, threeD = qkv.shape
    D = threeD // 3
    Dh = D // num_heads

    def kernel(rope_ref, z_ref, o_ref):
        rope_v = rope_ref[...]                 # (N, 2*Dh) f32
        sin = rope_v[:, :Dh]
        cos = rope_v[:, Dh:]
        z = z_ref[...]                         # (N, 3D) bf16

        def rot(xh):                           # NeoX rotate-half
            return jnp.concatenate([-xh[:, Dh // 2:], xh[:, :Dh // 2]], axis=-1)

        outs = []
        for h in range(num_heads):
            q = z[:, h * Dh:(h + 1) * Dh].astype(jnp.float32)
            k = z[:, D + h * Dh:D + (h + 1) * Dh].astype(jnp.float32)
            v = z[:, 2 * D + h * Dh:2 * D + (h + 1) * Dh]
            q = q * cos + rot(q) * sin
            k = k * cos + rot(k) * sin
            # scores: contract the head dim of both operands (no in-kernel k.T)
            s = lax.dot_general(q.astype(z.dtype), k.astype(z.dtype),
                                (((1,), (1,)), ((), ())),
                                preferred_element_type=jnp.float32)   # (N, N)
            s = s - jnp.max(s, axis=-1, keepdims=True)
            p = jnp.exp(s)
            p = p * pl.reciprocal(jnp.sum(p, axis=-1, keepdims=True), approx=True)
            outs.append(jnp.dot(p.astype(v.dtype), v,
                                preferred_element_type=jnp.float32))  # (N, Dh)
        o_ref[...] = jnp.concatenate(outs, axis=-1).astype(o_ref.dtype)

    return pl.pallas_call(
        kernel,
        out_shape=jax.ShapeDtypeStruct((B, N, D), qkv.dtype),
        grid=(B,),
        in_specs=[
            pl.BlockSpec((N, 2 * Dh), lambda b: (0, 0)),
            pl.BlockSpec((None, N, threeD), lambda b: (b, 0, 0)),
        ],
        out_specs=pl.BlockSpec((None, N, D), lambda b: (b, 0, 0)),
        compiler_params=pltpu.CompilerParams(
            dimension_semantics=("parallel",),
            vmem_limit_bytes=_VMEM_LIMIT),
    )(rope, qkv)


# --------------------------- rope / param preparation -------------------------

def build_rope_neox(grid_size, head_dim, ref_feat_shape, temperature=10000.0):
    """timm RotaryEmbeddingCat (in_pixels=False) converted to NeoX layout.

    Returns (1 + H*W, 2*head_dim) = [sin | cos], row 0 (cls token) = identity.
    Equivalence with the interleaved reference holds because the matching
    per-head even/odd permutation is folded into the q/k projection weights."""
    num_bands = head_dim // 4
    exp = jnp.arange(num_bands, dtype=jnp.float32) / num_bands
    bands = 1.0 / (temperature ** exp)                               # (num_bands,)
    t = [jnp.arange(s, dtype=jnp.float32) / s * r
         for s, r in zip(grid_size, ref_feat_shape)]
    grid = jnp.stack(jnp.meshgrid(*t, indexing="ij"), axis=-1)        # (H, W, 2)
    pos = grid[..., None] * bands                                     # (H, W, 2, nb)
    n_sp = grid_size[0] * grid_size[1]
    half = pos.reshape(n_sp, -1)                                      # (Np, Dh/2)
    sin = jnp.concatenate([jnp.sin(half), jnp.sin(half)], axis=-1)    # (Np, Dh)
    cos = jnp.concatenate([jnp.cos(half), jnp.cos(half)], axis=-1)
    sin = jnp.concatenate([jnp.zeros((1, head_dim), jnp.float32), sin], axis=0)
    cos = jnp.concatenate([jnp.ones((1, head_dim), jnp.float32), cos], axis=0)
    return jnp.concatenate([sin, cos], axis=-1)                       # (N, 2*Dh)


def _head_perm(num_heads, head_dim):
    idx = jnp.arange(head_dim)
    even_odd = jnp.concatenate([idx[0::2], idx[1::2]])
    return jnp.concatenate([h * head_dim + even_odd for h in range(num_heads)])


def prepare_params(raw, num_heads, dtype=COMPUTE_DTYPE):
    """Pack raw (PyTorch-layout) parameters into fused, kernel-friendly form."""
    D = raw["cls_token"].shape[-1]
    Dh = D // num_heads
    scale = Dh ** -0.5
    perm = _head_perm(num_heads, Dh)

    out = {
        "patch_w": raw["patch_w"].astype(dtype),
        "patch_b": raw["patch_b"],
        "cls_token": raw["cls_token"].astype(dtype),
        "pos_embed": raw["pos_embed"].astype(dtype),
        "blocks": [],
    }
    for blk in raw["blocks"]:
        qw = (blk["q_w"] * scale)[:, perm]          # fold attention scale into q
        qb = (blk["q_b"] * scale)[perm]
        kw = blk["k_w"][:, perm]                    # k_proj has no bias
        wqkv = jnp.concatenate([qw, kw, blk["v_w"]], axis=1).astype(dtype)
        bqkv = jnp.concatenate([qb, jnp.zeros_like(qb), blk["v_b"]], axis=0)
        w1 = jnp.concatenate([blk["fc1g_w"], blk["fc1x_w"]], axis=1).astype(dtype)
        b1 = jnp.concatenate([blk["fc1g_b"], blk["fc1x_b"]], axis=0)
        out["blocks"].append({
            "norm1_w": blk["norm1_w"], "norm1_b": blk["norm1_b"],
            "wqkv": wqkv, "bqkv": bqkv,
            "proj_w": blk["proj_w"].astype(dtype), "proj_b": blk["proj_b"],
            "norm2_w": blk["norm2_w"], "norm2_b": blk["norm2_b"],
            "w1": w1, "b1": b1,
            "mlp_norm_w": blk["mlp_norm_w"], "mlp_norm_b": blk["mlp_norm_b"],
            "fc2_w": blk["fc2_w"].astype(dtype), "fc2_b": blk["fc2_b"],
        })
    return out


# ------------------------------ forward pass ----------------------------------

def block_forward(p, x, rope, B, N, num_heads):
    M, D = x.shape
    # attention branch: LN1 + fused QKV, rope+softmax in-kernel, proj+residual
    qkv = _ln_matmul(x, p["norm1_w"], p["norm1_b"], p["wqkv"], p["bqkv"])    # (M, 3D)
    o = _attention(qkv.reshape(B, N, 3 * D), rope, num_heads)                # (B, N, D)
    x = _matmul_bias(o.reshape(M, D), p["proj_w"], p["proj_b"], residual=x)  # (M, D)
    # SwiGLU MLP branch: LN2 + fused fc1, gate + mlp-LN, fc2 + residual
    z = _ln_matmul(x, p["norm2_w"], p["norm2_b"], p["w1"], p["b1"])          # (M, 2H)
    m = _swiglu_ln(z, p["mlp_norm_w"], p["mlp_norm_b"])                      # (M, H)
    x = _matmul_bias(m, p["fc2_w"], p["fc2_b"], residual=x)                  # (M, D)
    return x


@functools.partial(jax.jit, static_argnames=("patch_size", "num_heads"))
def eva_x_forward(params, rope, image, *, patch_size, num_heads):
    """EVA_X.forward_features(x, return_all_features=True).  image: NCHW."""
    B, C, H, W = image.shape
    P = patch_size
    gh, gw = H // P, W // P
    Np = gh * gw
    N = Np + 1
    D = params["cls_token"].shape[-1]

    # patch embed: conv(kernel=stride=P) == unfold + matmul
    img = image.astype(params["patch_w"].dtype)
    patches = (img.reshape(B, C, gh, P, gw, P)
               .transpose(0, 2, 4, 1, 3, 5)
               .reshape(B * Np, C * P * P))
    x = _matmul_bias(patches, params["patch_w"], params["patch_b"])          # (B*Np, D)
    x = x.reshape(B, Np, D)

    # _pos_embed: prepend cls token, add absolute pos embed
    cls = jnp.broadcast_to(params["cls_token"], (B, 1, D)).astype(x.dtype)
    x = jnp.concatenate([cls, x], axis=1) + params["pos_embed"].astype(x.dtype)
    x = x.reshape(B * N, D)

    for blk in params["blocks"]:
        x = block_forward(blk, x, rope, B, N, num_heads)

    # return_all_features=True => no final norm / fc_norm / head
    return x.reshape(B, N, D)


# --------------------------- parameter init ------------------------------------

def init_params(key, *, in_chans, patch_size, embed_dim, depth, num_heads,
                mlp_ratio, num_patches):
    hidden = int(embed_dim * mlp_ratio)          # same rounding as timm

    def nrm(k, shape):
        return 0.02 * jax.random.normal(k, shape, jnp.float32)

    keys = iter(jax.random.split(key, 8 + depth * 8))
    params = {
        "patch_w": nrm(next(keys), (in_chans * patch_size * patch_size, embed_dim)),
        "patch_b": nrm(next(keys), (embed_dim,)),
        "cls_token": nrm(next(keys), (1, 1, embed_dim)),
        "pos_embed": nrm(next(keys), (1, num_patches + 1, embed_dim)),
        "blocks": [],
    }
    for _ in range(depth):
        params["blocks"].append({
            "norm1_w": jnp.ones((embed_dim,), jnp.float32),
            "norm1_b": jnp.zeros((embed_dim,), jnp.float32),
            "q_w": nrm(next(keys), (embed_dim, embed_dim)),
            "q_b": jnp.zeros((embed_dim,), jnp.float32),
            "k_w": nrm(next(keys), (embed_dim, embed_dim)),   # k_proj has NO bias
            "v_w": nrm(next(keys), (embed_dim, embed_dim)),
            "v_b": jnp.zeros((embed_dim,), jnp.float32),
            "proj_w": nrm(next(keys), (embed_dim, embed_dim)),
            "proj_b": jnp.zeros((embed_dim,), jnp.float32),
            "norm2_w": jnp.ones((embed_dim,), jnp.float32),
            "norm2_b": jnp.zeros((embed_dim,), jnp.float32),
            "fc1g_w": nrm(next(keys), (embed_dim, hidden)),
            "fc1g_b": jnp.zeros((hidden,), jnp.float32),
            "fc1x_w": nrm(next(keys), (embed_dim, hidden)),
            "fc1x_b": jnp.zeros((hidden,), jnp.float32),
            "mlp_norm_w": jnp.ones((hidden,), jnp.float32),
            "mlp_norm_b": jnp.zeros((hidden,), jnp.float32),
            "fc2_w": nrm(next(keys), (hidden, embed_dim)),
            "fc2_b": jnp.zeros((embed_dim,), jnp.float32),
        })
    return params


class EVAXEncoderWrapperPallas:
    """Pallas analogue of EVAXEncoderWrapper: forward(image) -> all-token features."""
    # TODO(synk): checkpoint loading (torch.load + checkpoint_filter_fn) has no
    # Pallas equivalent; parameters are deterministic synthetic init instead.

    def __init__(self, key, *, image_size, patch_size, embed_dim, depth,
                 num_heads, mlp_ratio, in_chans=3, dtype=COMPUTE_DTYPE):
        self.patch_size = patch_size
        self.num_heads = num_heads
        gh = gw = image_size // patch_size
        raw = init_params(
            key, in_chans=in_chans, patch_size=patch_size, embed_dim=embed_dim,
            depth=depth, num_heads=num_heads, mlp_ratio=mlp_ratio,
            num_patches=gh * gw)
        self.params = prepare_params(raw, num_heads, dtype)
        head_dim = embed_dim // num_heads
        # ref_feat_shape scaled to the toy grid (real config: (14, 14) == 224/16 grid)
        self.rope = build_rope_neox((gh, gw), head_dim, ref_feat_shape=(gh, gw))

    def __call__(self, image):
        return eva_x_forward(self.params, self.rope, image,
                             patch_size=self.patch_size, num_heads=self.num_heads)


# --------------------------------- main ----------------------------------------

if __name__ == "__main__":
    key = jax.random.PRNGKey(0)
    k_param, k_img = jax.random.split(key)

    # Small shapes consistent with the EVA-X base config (scaled down):
    # image 16x16, patch 8 -> 2x2 grid -> 4 patches + 1 cls = 5 tokens
    # embed_dim 48, 4 heads (head_dim 12), depth 2, mlp_ratio 4*2/3 -> hidden 128
    model = EVAXEncoderWrapperPallas(
        k_param, image_size=16, patch_size=8, embed_dim=48,
        depth=2, num_heads=4, mlp_ratio=4 * 2 / 3, in_chans=3)

    image = jax.random.normal(k_img, (2, 3, 16, 16), jnp.float32)   # NCHW like PyTorch
    out = model(image)
    out = jax.block_until_ready(out)

    assert out.shape == (2, 5, 48), out.shape
    assert bool(jnp.all(jnp.isfinite(out.astype(jnp.float32))))
    print("KERNEL_OK")
</pallas_src>

<mosaic_0001>
module attributes {stable_mosaic.version = 11 : i64} {
  func.func @kernel_nores(%arg0: i32, %arg1: i32, %arg2: i32, %arg3: memref<8x192xbf16, #tpu.memory_space<vmem>>, %arg4: memref<192x48xbf16, #tpu.memory_space<vmem>>, %arg5: memref<1x48xf32, #tpu.memory_space<vmem>>, %arg6: memref<8x48xbf16, #tpu.memory_space<vmem>>, %arg7: memref<8x48xf32, #tpu.memory_space<vmem>>) attributes {dimension_semantics = [#tpu.dimension_semantics<parallel>, #tpu.dimension_semantics<parallel>, #tpu.dimension_semantics<arbitrary>], iteration_bounds = array<i64: 1, 1, 1>, scalar_prefetch = 0 : i64, scratch_operands = 1 : i64, tpu.core_type = #tpu.core_type<tc>, window_params = [{transform_indices = @transform_0, window_bounds = array<i64: 8, 192>}, {transform_indices = @transform_1, window_bounds = array<i64: 192, 48>}, {transform_indices = @transform_2, window_bounds = array<i64: 1, 48>}, {transform_indices = @transform_3, window_bounds = array<i64: 8, 48>}]} {
    %c0_i32 = arith.constant 0 : i32
    %0 = arith.cmpi eq, %arg2, %c0_i32 : i32
    %1 = arith.extui %0 : i1 to i32
    %c0_i32_0 = arith.constant 0 : i32
    %2 = arith.cmpi ne, %1, %c0_i32_0 : i32
    scf.if %2 {
      %cst_10 = arith.constant 0.000000e+00 : f32
      %12 = vector.broadcast %cst_10 : f32 to vector<8x48xf32>
      %c0_11 = arith.constant 0 : index
      %c0_12 = arith.constant 0 : index
      %13 = vector.load %arg7[%c0_11, %c0_12] : memref<8x48xf32, #tpu.memory_space<vmem>>, vector<8x48xf32>
      tpu.vector_store %arg7[%c0_11, %c0_12], %12 {strides = array<i32>} : memref<8x48xf32, #tpu.memory_space<vmem>>, vector<8x48xf32>,
    } else {
    }
    %c0 = arith.constant 0 : index
    %c0_1 = arith.constant 0 : index
    %3 = vector.load %arg7[%c0, %c0_1] : memref<8x48xf32, #tpu.memory_space<vmem>>, vector<8x48xf32>
    %c0_2 = arith.constant 0 : index
    %c0_3 = arith.constant 0 : index
    %4 = vector.load %arg3[%c0_2, %c0_3] : memref<8x192xbf16, #tpu.memory_space<vmem>>, vector<8x192xbf16>
    %c0_4 = arith.constant 0 : index
    %c0_5 = arith.constant 0 : index
    %5 = vector.load %arg4[%c0_4, %c0_5] : memref<192x48xbf16, #tpu.memory_space<vmem>>, vector<192x48xbf16>
    %cst = arith.constant dense<0.000000e+00> : vector<8x48xf32>
    %6 = tpu.matmul %4, %5, %cst {dimension_numbers = #tpu.dot_dimension_numbers<[1], [0], [0], [1], [0, 0, 1, 1], [], []>} : vector<8x192xbf16>, vector<192x48xbf16>, vector<8x48xf32> -> vector<8x48xf32>
    %7 = arith.addf %3, %6 : vector<8x48xf32>
    %c0_6 = arith.constant 0 : index
    %c0_7 = arith.constant 0 : index
    %8 = vector.load %arg7[%c0_6, %c0_7] : memref<8x48xf32, #tpu.memory_space<vmem>>, vector<8x48xf32>
    tpu.vector_store %arg7[%c0_6, %c0_7], %7 {strides = array<i32>} : memref<8x48xf32, #tpu.memory_space<vmem>>, vector<8x48xf32>,
    %c0_i32_8 = arith.constant 0 : i32
    %9 = arith.cmpi eq, %arg2, %c0_i32_8 : i32
    %10 = arith.extui %9 : i1 to i32
    %c0_i32_9 = arith.constant 0 : i32
    %11 = arith.cmpi ne, %10, %c0_i32_9 : i32
    scf.if %11 {
      %c0_10 = arith.constant 0 : index
      %c0_11 = arith.constant 0 : index
      %12 = vector.load %arg7[%c0_10, %c0_11] : memref<8x48xf32, #tpu.memory_space<vmem>>, vector<8x48xf32>
      %c0_12 = arith.constant 0 : index
      %c0_13 = arith.constant 0 : index
      %13 = vector.load %arg5[%c0_12, %c0_13] : memref<1x48xf32, #tpu.memory_space<vmem>>, vector<1x48xf32>
      %14 = vector.broadcast %13 : vector<1x48xf32> to vector<8x48xf32>
      %15 = arith.addf %12, %14 : vector<8x48xf32>
      %16 = arith.truncf %15 : vector<8x48xf32> to vector<8x48xbf16>
      %c0_14 = arith.constant 0 : index
      %c0_15 = arith.constant 0 : index
      %17 = vector.load %arg6[%c0_14, %c0_15] : memref<8x48xbf16, #tpu.memory_space<vmem>>, vector<8x48xbf16>
      tpu.vector_store %arg6[%c0_14, %c0_15], %16 {strides = array<i32>} : memref<8x48xbf16, #tpu.memory_space<vmem>>, vector<8x48xbf16>,
    } else {
    }
    return
  }
  func.func @transform_0(%arg0: i32, %arg1: i32, %arg2: i32) -> (i32, i32) {
    %c0_i32 = arith.constant 0 : i32
    return %arg0, %arg2 : i32, i32
  }
  func.func @transform_1(%arg0: i32, %arg1: i32, %arg2: i32) -> (i32, i32) {
    %c0_i32 = arith.constant 0 : i32
    return %arg2, %arg1 : i32, i32
  }
  func.func @transform_2(%arg0: i32, %arg1: i32, %arg2: i32) -> (i32, i32) {
    %c0_i32 = arith.constant 0 : i32
    %c0_i32_0 = arith.constant 0 : i32
    return %c0_i32, %arg1 : i32, i32
  }
  func.func @transform_3(%arg0: i32, %arg1: i32, %arg2: i32) -> (i32, i32) {
    %c0_i32 = arith.constant 0 : i32
    return %arg0, %arg1 : i32, i32
  }
}

module attributes {stable_mosaic.version = 11 : i64} {
  func.func @kernel(%arg0: i32, %arg1: i32, %arg2: memref<10x48xbf16, #tpu.memory_space<vmem>>, %arg3: memref<1x48xf32, #tpu.memory_space<vmem>>, %arg4: memref<1x48xf32, #tpu.memory_space<vmem>>, %arg5: memref<48x144xbf16, #tpu.memory_space<vmem>>, %arg6: memref<1x144xf32, #tpu.memory_space<vmem>>, %arg7: memref<10x144xbf16, #tpu.memory_space<vmem>>) attributes {dimension_semantics = [#tpu.dimension_semantics<parallel>, #tpu.dimension_semantics<parallel>], iteration_bounds = array<i64: 1, 1>, scalar_prefetch = 0 : i64, scratch_operands = 0 : i64, tpu.core_type = #tpu.core_type<tc>, window_params = [{transform_indices = @transform_0, window_bounds = array<i64: 10, 48>}, {pipeline_mode = #tpu.pipeline_mode<synchronous>, transform_indices = @transform_1, window_bounds = array<i64: 1, 48>}, {pipeline_mode = #tpu.pipeline_mode<synchronous>, transform_indices = @transform_2, window_bounds = array<i64: 1, 48>}, {transform_indices = @transform_3, window_bounds = array<i64: 48, 144>}, {transform_indices = @transform_4, window_bounds = array<i64: 1, 144>}, {transform_indices = @transform_5, window_bounds = array<i64: 10, 144>}]} {
    %c0 = arith.constant 0 : index
    %c0_0 = arith.constant 0 : index
    %0 = vector.load %arg2[%c0, %c0_0] : memref<10x48xbf16, #tpu.memory_space<vmem>>, vector<10x48xbf16>
    %1 = arith.extf %0 : vector<10x48xbf16> to vector<10x48xf32>
    %cst = arith.constant dense<0.000000e+00> : vector<10xf32>
    %2 = vector.multi_reduction <add>, %1, %cst [1] : vector<10x48xf32> to vector<10xf32>
    %3 = vector.shape_cast %2 : vector<10xf32> to vector<10x1xf32>
    %cst_1 = arith.constant 4.800000e+01 : f32
    %4 = vector.broadcast %cst_1 : f32 to vector<10x1xf32>
    %5 = arith.divf %3, %4 : vector<10x1xf32>
    %6 = vector.broadcast %5 : vector<10x1xf32> to vector<10x48xf32>
    %7 = arith.subf %1, %6 : vector<10x48xf32>
    %8 = arith.mulf %7, %7 : vector<10x48xf32>
    %cst_2 = arith.constant dense<0.000000e+00> : vector<10xf32>
    %9 = vector.multi_reduction <add>, %8, %cst_2 [1] : vector<10x48xf32> to vector<10xf32>
    %10 = vector.shape_cast %9 : vector<10xf32> to vector<10x1xf32>
    %cst_3 = arith.constant 4.800000e+01 : f32
    %11 = vector.broadcast %cst_3 : f32 to vector<10x1xf32>
    %12 = arith.divf %10, %11 : vector<10x1xf32>
    %13 = vector.broadcast %5 : vector<10x1xf32> to vector<10x48xf32>
    %14 = arith.subf %1, %13 : vector<10x48xf32>
    %cst_4 = arith.constant 9.99999997E-7 : f32
    %15 = vector.broadcast %cst_4 : f32 to vector<10x1xf32>
    %16 = arith.addf %12, %15 : vector<10x1xf32>
    %17 = math.rsqrt %16 : vector<10x1xf32>
    %18 = vector.broadcast %17 : vector<10x1xf32> to vector<10x48xf32>
    %19 = arith.mulf %14, %18 : vector<10x48xf32>
    %c0_5 = arith.constant 0 : index
    %c0_6 = arith.constant 0 : index
    %20 = vector.load %arg3[%c0_5, %c0_6] : memref<1x48xf32, #tpu.memory_space<vmem>>, vector<1x48xf32>
    %21 = vector.broadcast %20 : vector<1x48xf32> to vector<10x48xf32>
    %22 = arith.mulf %19, %21 : vector<10x48xf32>
    %c0_7 = arith.constant 0 : index
    %c0_8 = arith.constant 0 : index
    %23 = vector.load %arg4[%c0_7, %c0_8] : memref<1x48xf32, #tpu.memory_space<vmem>>, vector<1x48xf32>
    %24 = vector.broadcast %23 : vector<1x48xf32> to vector<10x48xf32>
    %25 = arith.addf %22, %24 : vector<10x48xf32>
    %26 = arith.truncf %25 : vector<10x48xf32> to vector<10x48xbf16>
    %c0_9 = arith.constant 0 : index
    %c0_10 = arith.constant 0 : index
    %27 = vector.load %arg5[%c0_9, %c0_10] : memref<48x144xbf16, #tpu.memory_space<vmem>>, vector<48x144xbf16>
    %cst_11 = arith.constant dense<0.000000e+00> : vector<10x144xf32>
    %28 = tpu.matmul %26, %27, %cst_11 {dimension_numbers = #tpu.dot_dimension_numbers<[1], [0], [0], [1], [0, 0, 1, 1], [], []>} : vector<10x48xbf16>, vector<48x144xbf16>, vector<10x144xf32> -> vector<10x144xf32>
    %c0_12 = arith.constant 0 : index
    %c0_13 = arith.constant 0 : index
    %29 = vector.load %arg6[%c0_12, %c0_13] : memref<1x144xf32, #tpu.memory_space<vmem>>, vector<1x144xf32>
    %30 = vector.broadcast %29 : vector<1x144xf32> to vector<10x144xf32>
    %31 = arith.addf %28, %30 : vector<10x144xf32>
    %32 = arith.truncf %31 : vector<10x144xf32> to vector<10x144xbf16>
    %c0_14 = arith.constant 0 : index
    %c0_15 = arith.constant 0 : index
    %33 = vector.load %arg7[%c0_14, %c0_15] : memref<10x144xbf16, #tpu.memory_space<vmem>>, vector<10x144xbf16>
    tpu.vector_store %arg7[%c0_14, %c0_15], %32 {strides = array<i32>} : memref<10x144xbf16, #tpu.memory_space<vmem>>, vector<10x144xbf16>,
    return
  }
  func.func @transform_0(%arg0: i32, %arg1: i32) -> (i32, i32) {
    %c0_i32 = arith.constant 0 : i32
    %c0_i32_0 = arith.constant 0 : i32
    return %arg0, %c0_i32 : i32, i32
  }
  func.func @transform_1(%arg0: i32, %arg1: i32) -> (i32, i32) {
    %c0_i32 = arith.constant 0 : i32
    %c0_i32_0 = arith.constant 0 : i32
    %c0_i32_1 = arith.constant 0 : i32
    return %c0_i32, %c0_i32_0 : i32, i32
  }
  func.func @transform_2(%arg0: i32, %arg1: i32) -> (i32, i32) {
    %c0_i32 = arith.constant 0 : i32
    %c0_i32_0 = arith.constant 0 : i32
    %c0_i32_1 = arith.constant 0 : i32
    return %c0_i32, %c0_i32_0 : i32, i32
  }
  func.func @transform_3(%arg0: i32, %arg1: i32) -> (i32, i32) {
    %c0_i32 = arith.constant 0 : i32
    %c0_i32_0 = arith.constant 0 : i32
    return %c0_i32, %arg1 : i32, i32
  }
  func.func @transform_4(%arg0: i32, %arg1: i32) -> (i32, i32) {
    %c0_i32 = arith.constant 0 : i32
    %c0_i32_0 = arith.constant 0 : i32
    return %c0_i32, %arg1 : i32, i32
  }
  func.func @transform_5(%arg0: i32, %arg1: i32) -> (i32, i32) {
    %c0_i32 = arith.constant 0 : i32
    return %arg0, %arg1 : i32, i32
  }
}

module attributes {stable_mosaic.version = 11 : i64} {
  func.func @kernel_res(%arg0: i32, %arg1: i32, %arg2: i32, %arg3: memref<10x48xbf16, #tpu.memory_space<vmem>>, %arg4: memref<48x48xbf16, #tpu.memory_space<vmem>>, %arg5: memref<1x48xf32, #tpu.memory_space<vmem>>, %arg6: memref<10x48xbf16, #tpu.memory_space<vmem>>, %arg7: memref<10x48xbf16, #tpu.memory_space<vmem>>, %arg8: memref<10x48xf32, #tpu.memory_space<vmem>>) attributes {dimension_semantics = [#tpu.dimension_semantics<parallel>, #tpu.dimension_semantics<parallel>, #tpu.dimension_semantics<arbitrary>], iteration_bounds = array<i64: 1, 1, 1>, scalar_prefetch = 0 : i64, scratch_operands = 1 : i64, tpu.core_type = #tpu.core_type<tc>, window_params = [{transform_indices = @transform_0, window_bounds = array<i64: 10, 48>}, {transform_indices = @transform_1, window_bounds = array<i64: 48, 48>}, {transform_indices = @transform_2, window_bounds = array<i64: 1, 48>}, {transform_indices = @transform_3, window_bounds = array<i64: 10, 48>}, {transform_indices = @transform_4, window_bounds = array<i64: 10, 48>}]} {
    %c0_i32 = arith.constant 0 : i32
    %0 = arith.cmpi eq, %arg2, %c0_i32 : i32
    %1 = arith.extui %0 : i1 to i32
    %c0_i32_0 = arith.constant 0 : i32
    %2 = arith.cmpi ne, %1, %c0_i32_0 : i32
    scf.if %2 {
      %cst_10 = arith.constant 0.000000e+00 : f32
      %12 = vector.broadcast %cst_10 : f32 to vector<10x48xf32>
      %c0_11 = arith.constant 0 : index
      %c0_12 = arith.constant 0 : index
      %13 = vector.load %arg8[%c0_11, %c0_12] : memref<10x48xf32, #tpu.memory_space<vmem>>, vector<10x48xf32>
      tpu.vector_store %arg8[%c0_11, %c0_12], %12 {strides = array<i32>} : memref<10x48xf32, #tpu.memory_space<vmem>>, vector<10x48xf32>,
    } else {
    }
    %c0 = arith.constant 0 : index
    %c0_1 = arith.constant 0 : index
    %3 = vector.load %arg8[%c0, %c0_1] : memref<10x48xf32, #tpu.memory_space<vmem>>, vector<10x48xf32>
    %c0_2 = arith.constant 0 : index
    %c0_3 = arith.constant 0 : index
    %4 = vector.load %arg3[%c0_2, %c0_3] : memref<10x48xbf16, #tpu.memory_space<vmem>>, vector<10x48xbf16>
    %c0_4 = arith.constant 0 : index
    %c0_5 = arith.constant 0 : index
    %5 = vector.load %arg4[%c0_4, %c0_5] : memref<48x48xbf16, #tpu.memory_space<vmem>>, vector<48x48xbf16>
    %cst = arith.constant dense<0.000000e+00> : vector<10x48xf32>
    %6 = tpu.matmul %4, %5, %cst {dimension_numbers = #tpu.dot_dimension_numbers<[1], [0], [0], [1], [0, 0, 1, 1], [], []>} : vector<10x48xbf16>, vector<48x48xbf16>, vector<10x48xf32> -> vector<10x48xf32>
    %7 = arith.addf %3, %6 : vector<10x48xf32>
    %c0_6 = arith.constant 0 : index
    %c0_7 = arith.constant 0 : index
    %8 = vector.load %arg8[%c0_6, %c0_7] : memref<10x48xf32, #tpu.memory_space<vmem>>, vector<10x48xf32>
    tpu.vector_store %arg8[%c0_6, %c0_7], %7 {strides = array<i32>} : memref<10x48xf32, #tpu.memory_space<vmem>>, vector<10x48xf32>,
    %c0_i32_8 = arith.constant 0 : i32
    %9 = arith.cmpi eq, %arg2, %c0_i32_8 : i32
    %10 = arith.extui %9 : i1 to i32
    %c0_i32_9 = arith.constant 0 : i32
    %11 = arith.cmpi ne, %10, %c0_i32_9 : i32
    scf.if %11 {
      %c0_10 = arith.constant 0 : index
      %c0_11 = arith.constant 0 : index
      %12 = vector.load %arg8[%c0_10, %c0_11] : memref<10x48xf32, #tpu.memory_space<vmem>>, vector<10x48xf32>
      %c0_12 = arith.constant 0 : index
      %c0_13 = arith.constant 0 : index
      %13 = vector.load %arg5[%c0_12, %c0_13] : memref<1x48xf32, #tpu.memory_space<vmem>>, vector<1x48xf32>
      %14 = vector.broadcast %13 : vector<1x48xf32> to vector<10x48xf32>
      %15 = arith.addf %12, %14 : vector<10x48xf32>
      %c0_14 = arith.constant 0 : index
      %c0_15 = arith.constant 0 : index
      %16 = vector.load %arg6[%c0_14, %c0_15] : memref<10x48xbf16, #tpu.memory_space<vmem>>, vector<10x48xbf16>
      %17 = arith.extf %16 : vector<10x48xbf16> to vector<10x48xf32>
      %18 = arith.addf %15, %17 : vector<10x48xf32>
      %19 = arith.truncf %18 : vector<10x48xf32> to vector<10x48xbf16>
      %c0_16 = arith.constant 0 : index
      %c0_17 = arith.constant 0 : index
      %20 = vector.load %arg7[%c0_16, %c0_17] : memref<10x48xbf16, #tpu.memory_space<vmem>>, vector<10x48xbf16>
      tpu.vector_store %arg7[%c0_16, %c0_17], %19 {strides = array<i32>} : memref<10x48xbf16, #tpu.memory_space<vmem>>, vector<10x48xbf16>,
    } else {
    }
    return
  }
  func.func @transform_0(%arg0: i32, %arg1: i32, %arg2: i32) -> (i32, i32) {
    %c0_i32 = arith.constant 0 : i32
    return %arg0, %arg2 : i32, i32
  }
  func.func @transform_1(%arg0: i32, %arg1: i32, %arg2: i32) -> (i32, i32) {
    %c0_i32 = arith.constant 0 : i32
    return %arg2, %arg1 : i32, i32
  }
  func.func @transform_2(%arg0: i32, %arg1: i32, %arg2: i32) -> (i32, i32) {
    %c0_i32 = arith.constant 0 : i32
    %c0_i32_0 = arith.constant 0 : i32
    return %c0_i32, %arg1 : i32, i32
  }
  func.func @transform_3(%arg0: i32, %arg1: i32, %arg2: i32) -> (i32, i32) {
    %c0_i32 = arith.constant 0 : i32
    return %arg0, %arg1 : i32, i32
  }
  func.func @transform_4(%arg0: i32, %arg1: i32, %arg2: i32) -> (i32, i32) {
    %c0_i32 = arith.constant 0 : i32
    return %arg0, %arg1 : i32, i32
  }
}

module attributes {stable_mosaic.version = 11 : i64} {
  func.func @kernel(%arg0: i32, %arg1: memref<5x24xf32, #tpu.memory_space<vmem>>, %arg2: memref<1x5x144xbf16, #tpu.memory_space<vmem>>, %arg3: memref<1x5x48xbf16, #tpu.memory_space<vmem>>) attributes {dimension_semantics = [#tpu.dimension_semantics<parallel>], iteration_bounds = array<i64: 2>, scalar_prefetch = 0 : i64, scratch_operands = 0 : i64, tpu.core_type = #tpu.core_type<tc>, window_params = [{pipeline_mode = #tpu.pipeline_mode<synchronous>, transform_indices = @transform_0, window_bounds = array<i64: 5, 24>}, {transform_indices = @transform_1, window_bounds = array<i64: 1, 5, 144>}, {transform_indices = @transform_2, window_bounds = array<i64: 1, 5, 48>}]} {
    %c0 = arith.constant 0 : index
    %c0_0 = arith.constant 0 : index
    %0 = vector.load %arg1[%c0, %c0_0] : memref<5x24xf32, #tpu.memory_space<vmem>>, vector<5x24xf32>
    %1 = vector.extract_strided_slice %0 {offsets = [0, 0], sizes = [5, 12], strides = [1, 1]} : vector<5x24xf32> to vector<5x12xf32>
    %2 = vector.extract_strided_slice %0 {offsets = [0, 12], sizes = [5, 12], strides = [1, 1]} : vector<5x24xf32> to vector<5x12xf32>
    %c0_1 = arith.constant 0 : index
    %c0_2 = arith.constant 0 : index
    %c0_3 = arith.constant 0 : index
    %3 = vector.load %arg2[%c0_1, %c0_2, %c0_3] : memref<1x5x144xbf16, #tpu.memory_space<vmem>>, vector<1x5x144xbf16>
    %4 = vector.shape_cast %3 : vector<1x5x144xbf16> to vector<5x144xbf16>
    %5 = vector.extract_strided_slice %4 {offsets = [0, 0], sizes = [5, 12], strides = [1, 1]} : vector<5x144xbf16> to vector<5x12xbf16>
    %6 = arith.extf %5 : vector<5x12xbf16> to vector<5x12xf32>
    %7 = vector.extract_strided_slice %4 {offsets = [0, 48], sizes = [5, 12], strides = [1, 1]} : vector<5x144xbf16> to vector<5x12xbf16>
    %8 = arith.extf %7 : vector<5x12xbf16> to vector<5x12xf32>
    %9 = vector.extract_strided_slice %4 {offsets = [0, 96], sizes = [5, 12], strides = [1, 1]} : vector<5x144xbf16> to vector<5x12xbf16>
    %10 = arith.mulf %6, %2 : vector<5x12xf32>
    %11 = vector.extract_strided_slice %6 {offsets = [0, 6], sizes = [5, 6], strides = [1, 1]} : vector<5x12xf32> to vector<5x6xf32>
    %cst = arith.constant 0.000000e+00 : f32
    %12 = vector.broadcast %cst : f32 to vector<5x6xf32>
    %13 = arith.subf %12, %11 : vector<5x6xf32>
    %14 = vector.extract_strided_slice %6 {offsets = [0, 0], sizes = [5, 6], strides = [1, 1]} : vector<5x12xf32> to vector<5x6xf32>
    %15 = tpu.concatenate %13, %14 in 1 : vector<5x6xf32>, vector<5x6xf32> -> vector<5x12xf32>
    %16 = arith.mulf %15, %1 : vector<5x12xf32>
    %17 = arith.addf %10, %16 : vector<5x12xf32>
    %18 = arith.mulf %8, %2 : vector<5x12xf32>
    %19 = vector.extract_strided_slice %8 {offsets = [0, 6], sizes = [5, 6], strides = [1, 1]} : vector<5x12xf32> to vector<5x6xf32>
    %cst_4 = arith.constant 0.000000e+00 : f32
    %20 = vector.broadcast %cst_4 : f32 to vector<5x6xf32>
    %21 = arith.subf %20, %19 : vector<5x6xf32>
    %22 = vector.extract_strided_slice %8 {offsets = [0, 0], sizes = [5, 6], strides = [1, 1]} : vector<5x12xf32> to vector<5x6xf32>
    %23 = tpu.concatenate %21, %22 in 1 : vector<5x6xf32>, vector<5x6xf32> -> vector<5x12xf32>
    %24 = arith.mulf %23, %1 : vector<5x12xf32>
    %25 = arith.addf %18, %24 : vector<5x12xf32>
    %26 = arith.truncf %17 : vector<5x12xf32> to vector<5x12xbf16>
    %27 = arith.truncf %25 : vector<5x12xf32> to vector<5x12xbf16>
    %cst_5 = arith.constant dense<0.000000e+00> : vector<5x5xf32>
    %28 = tpu.matmul %26, %27, %cst_5 {dimension_numbers = #tpu.dot_dimension_numbers<[1], [1], [0], [0], [0, 0, 1, 0], [], []>} : vector<5x12xbf16>, vector<5x12xbf16>, vector<5x5xf32> -> vector<5x5xf32>
    %cst_6 = arith.constant dense<0xFF800000> : vector<5xf32>
    %29 = vector.multi_reduction <maximumf>, %28, %cst_6 [1] : vector<5x5xf32> to vector<5xf32>
    %30 = vector.shape_cast %29 : vector<5xf32> to vector<5x1xf32>
    %31 = vector.broadcast %30 : vector<5x1xf32> to vector<5x5xf32>
    %32 = arith.subf %28, %31 : vector<5x5xf32>
    %33 = math.exp %32 : vector<5x5xf32>
    %cst_7 = arith.constant dense<0.000000e+00> : vector<5xf32>
    %34 = vector.multi_reduction <add>, %33, %cst_7 [1] : vector<5x5xf32> to vector<5xf32>
    %35 = vector.shape_cast %34 : vector<5xf32> to vector<5x1xf32>
    %36 = tpu.reciprocal %35 {approx = true} : vector<5x1xf32> -> vector<5x1xf32>
    %37 = vector.broadcast %36 : vector<5x1xf32> to vector<5x5xf32>
    %38 = arith.mulf %33, %37 : vector<5x5xf32>
    %39 = arith.truncf %38 : vector<5x5xf32> to vector<5x5xbf16>
    %cst_8 = arith.constant dense<0.000000e+00> : vector<5x12xf32>
    %40 = tpu.matmul %39, %9, %cst_8 {dimension_numbers = #tpu.dot_dimension_numbers<[1], [0], [0], [1], [0, 0, 1, 1], [], []>} : vector<5x5xbf16>, vector<5x12xbf16>, vector<5x12xf32> -> vector<5x12xf32>
    %41 = vector.extract_strided_slice %4 {offsets = [0, 12], sizes = [5, 12], strides = [1, 1]} : vector<5x144xbf16> to vector<5x12xbf16>
    %42 = arith.extf %41 : vector<5x12xbf16> to vector<5x12xf32>
    %43 = vector.extract_strided_slice %4 {offsets = [0, 60], sizes = [5, 12], strides = [1, 1]} : vector<5x144xbf16> to vector<5x12xbf16>
    %44 = arith.extf %43 : vector<5x12xbf16> to vector<5x12xf32>
    %45 = vector.extract_strided_slice %4 {offsets = [0, 108], sizes = [5, 12], strides = [1, 1]} : vector<5x144xbf16> to vector<5x12xbf16>
    %46 = arith.mulf %42, %2 : vector<5x12xf32>
    %47 = vector.extract_strided_slice %42 {offsets = [0, 6], sizes = [5, 6], strides = [1, 1]} : vector<5x12xf32> to vector<5x6xf32>
    %cst_9 = arith.constant 0.000000e+00 : f32
    %48 = vector.broadcast %cst_9 : f32 to vector<5x6xf32>
    %49 = arith.subf %48, %47 : vector<5x6xf32>
    %50 = vector.extract_strided_slice %42 {offsets = [0, 0], sizes = [5, 6], strides = [1, 1]} : vector<5x12xf32> to vector<5x6xf32>
    %51 = tpu.concatenate %49, %50 in 1 : vector<5x6xf32>, vector<5x6xf32> -> vector<5x12xf32>
    %52 = arith.mulf %51, %1 : vector<5x12xf32>
    %53 = arith.addf %46, %52 : vector<5x12xf32>
    %54 = arith.mulf %44, %2 : vector<5x12xf32>
    %55 = vector.extract_strided_slice %44 {offsets = [0, 6], sizes = [5, 6], strides = [1, 1]} : vector<5x12xf32> to vector<5x6xf32>
    %cst_10 = arith.constant 0.000000e+00 : f32
    %56 = vector.broadcast %cst_10 : f32 to vector<5x6xf32>
    %57 = arith.subf %56, %55 : vector<5x6xf32>
    %58 = vector.extract_strided_slice %44 {offsets = [0, 0], sizes = [5, 6], strides = [1, 1]} : vector<5x12xf32> to vector<5x6xf32>
    %59 = tpu.concatenate %57, %58 in 1 : vector<5x6xf32>, vector<5x6xf32> -> vector<5x12xf32>
    %60 = arith.mulf %59, %1 : vector<5x12xf32>
    %61 = arith.addf %54, %60 : vector<5x12xf32>
    %62 = arith.truncf %53 : vector<5x12xf32> to vector<5x12xbf16>
    %63 = arith.truncf %61 : vector<5x12xf32> to vector<5x12xbf16>
    %cst_11 = arith.constant dense<0.000000e+00> : vector<5x5xf32>
    %64 = tpu.matmul %62, %63, %cst_11 {dimension_numbers = #tpu.dot_dimension_numbers<[1], [1], [0], [0], [0, 0, 1, 0], [], []>} : vector<5x12xbf16>, vector<5x12xbf16>, vector<5x5xf32> -> vector<5x5xf32>
    %cst_12 = arith.constant dense<0xFF800000> : vector<5xf32>
    %65 = vector.multi_reduction <maximumf>, %64, %cst_12 [1] : vector<5x5xf32> to vector<5xf32>
    %66 = vector.shape_cast %65 : vector<5xf32> to vector<5x1xf32>
    %67 = vector.broadcast %66 : vector<5x1xf32> to vector<5x5xf32>
    %68 = arith.subf %64, %67 : vector<5x5xf32>
    %69 = math.exp %68 : vector<5x5xf32>
    %cst_13 = arith.constant dense<0.000000e+00> : vector<5xf32>
    %70 = vector.multi_reduction <add>, %69, %cst_13 [1] : vector<5x5xf32> to vector<5xf32>
    %71 = vector.shape_cast %70 : vector<5xf32> to vector<5x1xf32>
    %72 = tpu.reciprocal %71 {approx = true} : vector<5x1xf32> -> vector<5x1xf32>
    %73 = vector.broadcast %72 : vector<5x1xf32> to vector<5x5xf32>
    %74 = arith.mulf %69, %73 : vector<5x5xf32>
    %75 = arith.truncf %74 : vector<5x5xf32> to vector<5x5xbf16>
    %cst_14 = arith.constant dense<0.000000e+00> : vector<5x12xf32>
    %76 = tpu.matmul %75, %45, %cst_14 {dimension_numbers = #tpu.dot_dimension_numbers<[1], [0], [0], [1], [0, 0, 1, 1], [], []>} : vector<5x5xbf16>, vector<5x12xbf16>, vector<5x12xf32> -> vector<5x12xf32>
    %77 = vector.extract_strided_slice %4 {offsets = [0, 24], sizes = [5, 12], strides = [1, 1]} : vector<5x144xbf16> to vector<5x12xbf16>
    %78 = arith.extf %77 : vector<5x12xbf16> to vector<5x12xf32>
    %79 = vector.extract_strided_slice %4 {offsets = [0, 72], sizes = [5, 12], strides = [1, 1]} : vector<5x144xbf16> to vector<5x12xbf16>
    %80 = arith.extf %79 : vector<5x12xbf16> to vector<5x12xf32>
    %81 = vector.extract_strided_slice %4 {offsets = [0, 120], sizes = [5, 12], strides = [1, 1]} : vector<5x144xbf16> to vector<5x12xbf16>
    %82 = arith.mulf %78, %2 : vector<5x12xf32>
    %83 = vector.extract_strided_slice %78 {offsets = [0, 6], sizes = [5, 6], strides = [1, 1]} : vector<5x12xf32> to vector<5x6xf32>
    %cst_15 = arith.constant 0.000000e+00 : f32
    %84 = vector.broadcast %cst_15 : f32 to vector<5x6xf32>
    %85 = arith.subf %84, %83 : vector<5x6xf32>
    %86 = vector.extract_strided_slice %78 {offsets = [0, 0], sizes = [5, 6], strides = [1, 1]} : vector<5x12xf32> to vector<5x6xf32>
    %87 = tpu.concatenate %85, %86 in 1 : vector<5x6xf32>, vector<5x6xf32> -> vector<5x12xf32>
    %88 = arith.mulf %87, %1 : vector<5x12xf32>
    %89 = arith.addf %82, %88 : vector<5x12xf32>
    %90 = arith.mulf %80, %2 : vector<5x12xf32>
    %91 = vector.extract_strided_slice %80 {offsets = [0, 6], sizes = [5, 6], strides = [1, 1]} : vector<5x12xf32> to vector<5x6xf32>
    %cst_16 = arith.constant 0.000000e+00 : f32
    %92 = vector.broadcast %cst_16 : f32 to vector<5x6xf32>
    %93 = arith.subf %92, %91 : vector<5x6xf32>
    %94 = vector.extract_strided_slice %80 {offsets = [0, 0], sizes = [5, 6], strides = [1, 1]} : vector<5x12xf32> to vector<5x6xf32>
    %95 = tpu.concatenate %93, %94 in 1 : vector<5x6xf32>, vector<5x6xf32> -> vector<5x12xf32>
    %96 = arith.mulf %95, %1 : vector<5x12xf32>
    %97 = arith.addf %90, %96 : vector<5x12xf32>
    %98 = arith.truncf %89 : vector<5x12xf32> to vector<5x12xbf16>
    %99 = arith.truncf %97 : vector<5x12xf32> to vector<5x12xbf16>
    %cst_17 = arith.constant dense<0.000000e+00> : vector<5x5xf32>
    %100 = tpu.matmul %98, %99, %cst_17 {dimension_numbers = #tpu.dot_dimension_numbers<[1], [1], [0], [0], [0, 0, 1, 0], [], []>} : vector<5x12xbf16>, vector<5x12xbf16>, vector<5x5xf32> -> vector<5x5xf32>
    %cst_18 = arith.constant dense<0xFF800000> : vector<5xf32>
    %101 = vector.multi_reduction <maximumf>, %100, %cst_18 [1] : vector<5x5xf32> to vector<5xf32>
    %102 = vector.shape_cast %101 : vector<5xf32> to vector<5x1xf32>
    %103 = vector.broadcast %102 : vector<5x1xf32> to vector<5x5xf32>
    %104 = arith.subf %100, %103 : vector<5x5xf32>
    %105 = math.exp %104 : vector<5x5xf32>
    %cst_19 = arith.constant dense<0.000000e+00> : vector<5xf32>
    %106 = vector.multi_reduction <add>, %105, %cst_19 [1] : vector<5x5xf32> to vector<5xf32>
    %107 = vector.shape_cast %106 : vector<5xf32> to vector<5x1xf32>
    %108 = tpu.reciprocal %107 {approx = true} : vector<5x1xf32> -> vector<5x1xf32>
    %109 = vector.broadcast %108 : vector<5x1xf32> to vector<5x5xf32>
    %110 = arith.mulf %105, %109 : vector<5x5xf32>
    %111 = arith.truncf %110 : vector<5x5xf32> to vector<5x5xbf16>
    %cst_20 = arith.constant dense<0.000000e+00> : vector<5x12xf32>
    %112 = tpu.matmul %111, %81, %cst_20 {dimension_numbers = #tpu.dot_dimension_numbers<[1], [0], [0], [1], [0, 0, 1, 1], [], []>} : vector<5x5xbf16>, vector<5x12xbf16>, vector<5x12xf32> -> vector<5x12xf32>
    %113 = vector.extract_strided_slice %4 {offsets = [0, 36], sizes = [5, 12], strides = [1, 1]} : vector<5x144xbf16> to vector<5x12xbf16>
    %114 = arith.extf %113 : vector<5x12xbf16> to vector<5x12xf32>
    %115 = vector.extract_strided_slice %4 {offsets = [0, 84], sizes = [5, 12], strides = [1, 1]} : vector<5x144xbf16> to vector<5x12xbf16>
    %116 = arith.extf %115 : vector<5x12xbf16> to vector<5x12xf32>
    %117 = vector.extract_strided_slice %4 {offsets = [0, 132], sizes = [5, 12], strides = [1, 1]} : vector<5x144xbf16> to vector<5x12xbf16>
    %118 = arith.mulf %114, %2 : vector<5x12xf32>
    %119 = vector.extract_strided_slice %114 {offsets = [0, 6], sizes = [5, 6], strides = [1, 1]} : vector<5x12xf32> to vector<5x6xf32>
    %cst_21 = arith.constant 0.000000e+00 : f32
    %120 = vector.broadcast %cst_21 : f32 to vector<5x6xf32>
    %121 = arith.subf %120, %119 : vector<5x6xf32>
    %122 = vector.extract_strided_slice %114 {offsets = [0, 0], sizes = [5, 6], strides = [1, 1]} : vector<5x12xf32> to vector<5x6xf32>
    %123 = tpu.concatenate %121, %122 in 1 : vector<5x6xf32>, vector<5x6xf32> -> vector<5x12xf32>
    %124 = arith.mulf %123, %1 : vector<5x12xf32>
    %125 = arith.addf %118, %124 : vector<5x12xf32>
    %126 = arith.mulf %116, %2 : vector<5x12xf32>
    %127 = vector.extract_strided_slice %116 {offsets = [0, 6], sizes = [5, 6], strides = [1, 1]} : vector<5x12xf32> to vector<5x6xf32>
    %cst_22 = arith.constant 0.000000e+00 : f32
    %128 = vector.broadcast %cst_22 : f32 to vector<5x6xf32>
    %129 = arith.subf %128, %127 : vector<5x6xf32>
    %130 = vector.extract_strided_slice %116 {offsets = [0, 0], sizes = [5, 6], strides = [1, 1]} : vector<5x12xf32> to vector<5x6xf32>
    %131 = tpu.concatenate %129, %130 in 1 : vector<5x6xf32>, vector<5x6xf32> -> vector<5x12xf32>
    %132 = arith.mulf %131, %1 : vector<5x12xf32>
    %133 = arith.addf %126, %132 : vector<5x12xf32>
    %134 = arith.truncf %125 : vector<5x12xf32> to vector<5x12xbf16>
    %135 = arith.truncf %133 : vector<5x12xf32> to vector<5x12xbf16>
    %cst_23 = arith.constant dense<0.000000e+00> : vector<5x5xf32>
    %136 = tpu.matmul %134, %135, %cst_23 {dimension_numbers = #tpu.dot_dimension_numbers<[1], [1], [0], [0], [0, 0, 1, 0], [], []>} : vector<5x12xbf16>, vector<5x12xbf16>, vector<5x5xf32> -> vector<5x5xf32>
    %cst_24 = arith.constant dense<0xFF800000> : vector<5xf32>
    %137 = vector.multi_reduction <maximumf>, %136, %cst_24 [1] : vector<5x5xf32> to vector<5xf32>
    %138 = vector.shape_cast %137 : vector<5xf32> to vector<5x1xf32>
    %139 = vector.broadcast %138 : vector<5x1xf32> to vector<5x5xf32>
    %140 = arith.subf %136, %139 : vector<5x5xf32>
    %141 = math.exp %140 : vector<5x5xf32>
    %cst_25 = arith.constant dense<0.000000e+00> : vector<5xf32>
    %142 = vector.multi_reduction <add>, %141, %cst_25 [1] : vector<5x5xf32> to vector<5xf32>
    %143 = vector.shape_cast %142 : vector<5xf32> to vector<5x1xf32>
    %144 = tpu.reciprocal %143 {approx = true} : vector<5x1xf32> -> vector<5x1xf32>
    %145 = vector.broadcast %144 : vector<5x1xf32> to vector<5x5xf32>
    %146 = arith.mulf %141, %145 : vector<5x5xf32>
    %147 = arith.truncf %146 : vector<5x5xf32> to vector<5x5xbf16>
    %cst_26 = arith.constant dense<0.000000e+00> : vector<5x12xf32>
    %148 = tpu.matmul %147, %117, %cst_26 {dimension_numbers = #tpu.dot_dimension_numbers<[1], [0], [0], [1], [0, 0, 1, 1], [], []>} : vector<5x5xbf16>, vector<5x12xbf16>, vector<5x12xf32> -> vector<5x12xf32>
    %149 = tpu.concatenate %40, %76, %112, %148 in 1 : vector<5x12xf32>, vector<5x12xf32>, vector<5x12xf32>, vector<5x12xf32> -> vector<5x48xf32>
    %150 = arith.truncf %149 : vector<5x48xf32> to vector<5x48xbf16>
    %c0_27 = arith.constant 0 : index
    %c0_28 = arith.constant 0 : index
    %c0_29 = arith.constant 0 : index
    %151 = vector.load %arg3[%c0_27, %c0_28, %c0_29] : memref<1x5x48xbf16, #tpu.memory_space<vmem>>, vector<1x5x48xbf16>
    %152 = vector.shape_cast %151 : vector<1x5x48xbf16> to vector<5x48xbf16>
    %153 = vector.shape_cast %150 : vector<5x48xbf16> to vector<1x5x48xbf16>
    tpu.vector_store %arg3[%c0_27, %c0_28, %c0_29], %153 {strides = array<i32>} : memref<1x5x48xbf16, #tpu.memory_space<vmem>>, vector<1x5x48xbf16>,
    return
  }
  func.func @transform_0(%arg0: i32) -> (i32, i32) {
    %c0_i32 = arith.constant 0 : i32
    %c0_i32_0 = arith.constant 0 : i32
    %c0_i32_1 = arith.constant 0 : i32
    return %c0_i32, %c0_i32_0 : i32, i32
  }
  func.func @transform_1(%arg0: i32) -> (i32, i32, i32) {
    %c0_i32 = arith.constant 0 : i32
    %c0_i32_0 = arith.constant 0 : i32
    %c0_i32_1 = arith.constant 0 : i32
    return %arg0, %c0_i32, %c0_i32_0 : i32, i32, i32
  }
  func.func @transform_2(%arg0: i32) -> (i32, i32, i32) {
    %c0_i32 = arith.constant 0 : i32
    %c0_i32_0 = arith.constant 0 : i32
    %c0_i32_1 = arith.constant 0 : i32
    return %arg0, %c0_i32, %c0_i32_0 : i32, i32, i32
  }
}

module attributes {stable_mosaic.version = 11 : i64} {
  func.func @kernel_res(%arg0: i32, %arg1: i32, %arg2: i32, %arg3: memref<10x128xbf16, #tpu.memory_space<vmem>>, %arg4: memref<128x48xbf16, #tpu.memory_space<vmem>>, %arg5: memref<1x48xf32, #tpu.memory_space<vmem>>, %arg6: memref<10x48xbf16, #tpu.memory_space<vmem>>, %arg7: memref<10x48xbf16, #tpu.memory_space<vmem>>, %arg8: memref<10x48xf32, #tpu.memory_space<vmem>>) attributes {dimension_semantics = [#tpu.dimension_semantics<parallel>, #tpu.dimension_semantics<parallel>, #tpu.dimension_semantics<arbitrary>], iteration_bounds = array<i64: 1, 1, 1>, scalar_prefetch = 0 : i64, scratch_operands = 1 : i64, tpu.core_type = #tpu.core_type<tc>, window_params = [{transform_indices = @transform_0, window_bounds = array<i64: 10, 128>}, {transform_indices = @transform_1, window_bounds = array<i64: 128, 48>}, {transform_indices = @transform_2, window_bounds = array<i64: 1, 48>}, {transform_indices = @transform_3, window_bounds = array<i64: 10, 48>}, {transform_indices = @transform_4, window_bounds = array<i64: 10, 48>}]} {
    %c0_i32 = arith.constant 0 : i32
    %0 = arith.cmpi eq, %arg2, %c0_i32 : i32
    %1 = arith.extui %0 : i1 to i32
    %c0_i32_0 = arith.constant 0 : i32
    %2 = arith.cmpi ne, %1, %c0_i32_0 : i32
    scf.if %2 {
      %cst_10 = arith.constant 0.000000e+00 : f32
      %12 = vector.broadcast %cst_10 : f32 to vector<10x48xf32>
      %c0_11 = arith.constant 0 : index
      %c0_12 = arith.constant 0 : index
      %13 = vector.load %arg8[%c0_11, %c0_12] : memref<10x48xf32, #tpu.memory_space<vmem>>, vector<10x48xf32>
      tpu.vector_store %arg8[%c0_11, %c0_12], %12 {strides = array<i32>} : memref<10x48xf32, #tpu.memory_space<vmem>>, vector<10x48xf32>,
    } else {
    }
    %c0 = arith.constant 0 : index
    %c0_1 = arith.constant 0 : index
    %3 = vector.load %arg8[%c0, %c0_1] : memref<10x48xf32, #tpu.memory_space<vmem>>, vector<10x48xf32>
    %c0_2 = arith.constant 0 : index
    %c0_3 = arith.constant 0 : index
    %4 = vector.load %arg3[%c0_2, %c0_3] : memref<10x128xbf16, #tpu.memory_space<vmem>>, vector<10x128xbf16>
    %c0_4 = arith.constant 0 : index
    %c0_5 = arith.constant 0 : index
    %5 = vector.load %arg4[%c0_4, %c0_5] : memref<128x48xbf16, #tpu.memory_space<vmem>>, vector<128x48xbf16>
    %cst = arith.constant dense<0.000000e+00> : vector<10x48xf32>
    %6 = tpu.matmul %4, %5, %cst {dimension_numbers = #tpu.dot_dimension_numbers<[1], [0], [0], [1], [0, 0, 1, 1], [], []>} : vector<10x128xbf16>, vector<128x48xbf16>, vector<10x48xf32> -> vector<10x48xf32>
    %7 = arith.addf %3, %6 : vector<10x48xf32>
    %c0_6 = arith.constant 0 : index
    %c0_7 = arith.constant 0 : index
    %8 = vector.load %arg8[%c0_6, %c0_7] : memref<10x48xf32, #tpu.memory_space<vmem>>, vector<10x48xf32>
    tpu.vector_store %arg8[%c0_6, %c0_7], %7 {strides = array<i32>} : memref<10x48xf32, #tpu.memory_space<vmem>>, vector<10x48xf32>,
    %c0_i32_8 = arith.constant 0 : i32
    %9 = arith.cmpi eq, %arg2, %c0_i32_8 : i32
    %10 = arith.extui %9 : i1 to i32
    %c0_i32_9 = arith.constant 0 : i32
    %11 = arith.cmpi ne, %10, %c0_i32_9 : i32
    scf.if %11 {
      %c0_10 = arith.constant 0 : index
      %c0_11 = arith.constant 0 : index
      %12 = vector.load %arg8[%c0_10, %c0_11] : memref<10x48xf32, #tpu.memory_space<vmem>>, vector<10x48xf32>
      %c0_12 = arith.constant 0 : index
      %c0_13 = arith.constant 0 : index
      %13 = vector.load %arg5[%c0_12, %c0_13] : memref<1x48xf32, #tpu.memory_space<vmem>>, vector<1x48xf32>
      %14 = vector.broadcast %13 : vector<1x48xf32> to vector<10x48xf32>
      %15 = arith.addf %12, %14 : vector<10x48xf32>
      %c0_14 = arith.constant 0 : index
      %c0_15 = arith.constant 0 : index
      %16 = vector.load %arg6[%c0_14, %c0_15] : memref<10x48xbf16, #tpu.memory_space<vmem>>, vector<10x48xbf16>
      %17 = arith.extf %16 : vector<10x48xbf16> to vector<10x48xf32>
      %18 = arith.addf %15, %17 : vector<10x48xf32>
      %19 = arith.truncf %18 : vector<10x48xf32> to vector<10x48xbf16>
      %c0_16 = arith.constant 0 : index
      %c0_17 = arith.constant 0 : index
      %20 = vector.load %arg7[%c0_16, %c0_17] : memref<10x48xbf16, #tpu.memory_space<vmem>>, vector<10x48xbf16>
      tpu.vector_store %arg7[%c0_16, %c0_17], %19 {strides = array<i32>} : memref<10x48xbf16, #tpu.memory_space<vmem>>, vector<10x48xbf16>,
    } else {
    }
    return
  }
  func.func @transform_0(%arg0: i32, %arg1: i32, %arg2: i32) -> (i32, i32) {
    %c0_i32 = arith.constant 0 : i32
    return %arg0, %arg2 : i32, i32
  }
  func.func @transform_1(%arg0: i32, %arg1: i32, %arg2: i32) -> (i32, i32) {
    %c0_i32 = arith.constant 0 : i32
    return %arg2, %arg1 : i32, i32
  }
  func.func @transform_2(%arg0: i32, %arg1: i32, %arg2: i32) -> (i32, i32) {
    %c0_i32 = arith.constant 0 : i32
    %c0_i32_0 = arith.constant 0 : i32
    return %c0_i32, %arg1 : i32, i32
  }
  func.func @transform_3(%arg0: i32, %arg1: i32, %arg2: i32) -> (i32, i32) {
    %c0_i32 = arith.constant 0 : i32
    return %arg0, %arg1 : i32, i32
  }
  func.func @transform_4(%arg0: i32, %arg1: i32, %arg2: i32) -> (i32, i32) {
    %c0_i32 = arith.constant 0 : i32
    return %arg0, %arg1 : i32, i32
  }
}

module attributes {stable_mosaic.version = 11 : i64} {
  func.func @kernel(%arg0: i32, %arg1: i32, %arg2: memref<10x48xbf16, #tpu.memory_space<vmem>>, %arg3: memref<1x48xf32, #tpu.memory_space<vmem>>, %arg4: memref<1x48xf32, #tpu.memory_space<vmem>>, %arg5: memref<48x256xbf16, #tpu.memory_space<vmem>>, %arg6: memref<1x256xf32, #tpu.memory_space<vmem>>, %arg7: memref<10x256xbf16, #tpu.memory_space<vmem>>) attributes {dimension_semantics = [#tpu.dimension_semantics<parallel>, #tpu.dimension_semantics<parallel>], iteration_bounds = array<i64: 1, 1>, scalar_prefetch = 0 : i64, scratch_operands = 0 : i64, tpu.core_type = #tpu.core_type<tc>, window_params = [{transform_indices = @transform_0, window_bounds = array<i64: 10, 48>}, {pipeline_mode = #tpu.pipeline_mode<synchronous>, transform_indices = @transform_1, window_bounds = array<i64: 1, 48>}, {pipeline_mode = #tpu.pipeline_mode<synchronous>, transform_indices = @transform_2, window_bounds = array<i64: 1, 48>}, {transform_indices = @transform_3, window_bounds = array<i64: 48, 256>}, {transform_indices = @transform_4, window_bounds = array<i64: 1, 256>}, {transform_indices = @transform_5, window_bounds = array<i64: 10, 256>}]} {
    %c0 = arith.constant 0 : index
    %c0_0 = arith.constant 0 : index
    %0 = vector.load %arg2[%c0, %c0_0] : memref<10x48xbf16, #tpu.memory_space<vmem>>, vector<10x48xbf16>
    %1 = arith.extf %0 : vector<10x48xbf16> to vector<10x48xf32>
    %cst = arith.constant dense<0.000000e+00> : vector<10xf32>
    %2 = vector.multi_reduction <add>, %1, %cst [1] : vector<10x48xf32> to vector<10xf32>
    %3 = vector.shape_cast %2 : vector<10xf32> to vector<10x1xf32>
    %cst_1 = arith.constant 4.800000e+01 : f32
    %4 = vector.broadcast %cst_1 : f32 to vector<10x1xf32>
    %5 = arith.divf %3, %4 : vector<10x1xf32>
    %6 = vector.broadcast %5 : vector<10x1xf32> to vector<10x48xf32>
    %7 = arith.subf %1, %6 : vector<10x48xf32>
    %8 = arith.mulf %7, %7 : vector<10x48xf32>
    %cst_2 = arith.constant dense<0.000000e+00> : vector<10xf32>
    %9 = vector.multi_reduction <add>, %8, %cst_2 [1] : vector<10x48xf32> to vector<10xf32>
    %10 = vector.shape_cast %9 : vector<10xf32> to vector<10x1xf32>
    %cst_3 = arith.constant 4.800000e+01 : f32
    %11 = vector.broadcast %cst_3 : f32 to vector<10x1xf32>
    %12 = arith.divf %10, %11 : vector<10x1xf32>
    %13 = vector.broadcast %5 : vector<10x1xf32> to vector<10x48xf32>
    %14 = arith.subf %1, %13 : vector<10x48xf32>
    %cst_4 = arith.constant 9.99999997E-7 : f32
    %15 = vector.broadcast %cst_4 : f32 to vector<10x1xf32>
    %16 = arith.addf %12, %15 : vector<10x1xf32>
    %17 = math.rsqrt %16 : vector<10x1xf32>
    %18 = vector.broadcast %17 : vector<10x1xf32> to vector<10x48xf32>
    %19 = arith.mulf %14, %18 : vector<10x48xf32>
    %c0_5 = arith.constant 0 : index
    %c0_6 = arith.constant 0 : index
    %20 = vector.load %arg3[%c0_5, %c0_6] : memref<1x48xf32, #tpu.memory_space<vmem>>, vector<1x48xf32>
    %21 = vector.broadcast %20 : vector<1x48xf32> to vector<10x48xf32>
    %22 = arith.mulf %19, %21 : vector<10x48xf32>
    %c0_7 = arith.constant 0 : index
    %c0_8 = arith.constant 0 : index
    %23 = vector.load %arg4[%c0_7, %c0_8] : memref<1x48xf32, #tpu.memory_space<vmem>>, vector<1x48xf32>
    %24 = vector.broadcast %23 : vector<1x48xf32> to vector<10x48xf32>
    %25 = arith.addf %22, %24 : vector<10x48xf32>
    %26 = arith.truncf %25 : vector<10x48xf32> to vector<10x48xbf16>
    %c0_9 = arith.constant 0 : index
    %c0_10 = arith.constant 0 : index
    %27 = vector.load %arg5[%c0_9, %c0_10] : memref<48x256xbf16, #tpu.memory_space<vmem>>, vector<48x256xbf16>
    %cst_11 = arith.constant dense<0.000000e+00> : vector<10x256xf32>
    %28 = tpu.matmul %26, %27, %cst_11 {dimension_numbers = #tpu.dot_dimension_numbers<[1], [0], [0], [1], [0, 0, 1, 1], [], []>} : vector<10x48xbf16>, vector<48x256xbf16>, vector<10x256xf32> -> vector<10x256xf32>
    %c0_12 = arith.constant 0 : index
    %c0_13 = arith.constant 0 : index
    %29 = vector.load %arg6[%c0_12, %c0_13] : memref<1x256xf32, #tpu.memory_space<vmem>>, vector<1x256xf32>
    %30 = vector.broadcast %29 : vector<1x256xf32> to vector<10x256xf32>
    %31 = arith.addf %28, %30 : vector<10x256xf32>
    %32 = arith.truncf %31 : vector<10x256xf32> to vector<10x256xbf16>
    %c0_14 = arith.constant 0 : index
    %c0_15 = arith.constant 0 : index
    %33 = vector.load %arg7[%c0_14, %c0_15] : memref<10x256xbf16, #tpu.memory_space<vmem>>, vector<10x256xbf16>
    tpu.vector_store %arg7[%c0_14, %c0_15], %32 {strides = array<i32>} : memref<10x256xbf16, #tpu.memory_space<vmem>>, vector<10x256xbf16>,
    return
  }
  func.func @transform_0(%arg0: i32, %arg1: i32) -> (i32, i32) {
    %c0_i32 = arith.constant 0 : i32
    %c0_i32_0 = arith.constant 0 : i32
    return %arg0, %c0_i32 : i32, i32
  }
  func.func @transform_1(%arg0: i32, %arg1: i32) -> (i32, i32) {
    %c0_i32 = arith.constant 0 : i32
    %c0_i32_0 = arith.constant 0 : i32
    %c0_i32_1 = arith.constant 0 : i32
    return %c0_i32, %c0_i32_0 : i32, i32
  }
  func.func @transform_2(%arg0: i32, %arg1: i32) -> (i32, i32) {
    %c0_i32 = arith.constant 0 : i32
    %c0_i32_0 = arith.constant 0 : i32
    %c0_i32_1 = arith.constant 0 : i32
    return %c0_i32, %c0_i32_0 : i32, i32
  }
  func.func @transform_3(%arg0: i32, %arg1: i32) -> (i32, i32) {
    %c0_i32 = arith.constant 0 : i32
    %c0_i32_0 = arith.constant 0 : i32
    return %c0_i32, %arg1 : i32, i32
  }
  func.func @transform_4(%arg0: i32, %arg1: i32) -> (i32, i32) {
    %c0_i32 = arith.constant 0 : i32
    %c0_i32_0 = arith.constant 0 : i32
    return %c0_i32, %arg1 : i32, i32
  }
  func.func @transform_5(%arg0: i32, %arg1: i32) -> (i32, i32) {
    %c0_i32 = arith.constant 0 : i32
    return %arg0, %arg1 : i32, i32
  }
}

module attributes {stable_mosaic.version = 11 : i64} {
  func.func @kernel(%arg0: i32, %arg1: memref<10x256xbf16, #tpu.memory_space<vmem>>, %arg2: memref<1x128xf32, #tpu.memory_space<vmem>>, %arg3: memref<1x128xf32, #tpu.memory_space<vmem>>, %arg4: memref<10x128xbf16, #tpu.memory_space<vmem>>) attributes {dimension_semantics = [#tpu.dimension_semantics<parallel>], iteration_bounds = array<i64: 1>, scalar_prefetch = 0 : i64, scratch_operands = 0 : i64, tpu.core_type = #tpu.core_type<tc>, window_params = [{transform_indices = @transform_0, window_bounds = array<i64: 10, 256>}, {pipeline_mode = #tpu.pipeline_mode<synchronous>, transform_indices = @transform_1, window_bounds = array<i64: 1, 128>}, {pipeline_mode = #tpu.pipeline_mode<synchronous>, transform_indices = @transform_2, window_bounds = array<i64: 1, 128>}, {transform_indices = @transform_3, window_bounds = array<i64: 10, 128>}]} {
    %c0 = arith.constant 0 : index
    %c0_0 = arith.constant 0 : index
    %0 = vector.load %arg1[%c0, %c0_0] : memref<10x256xbf16, #tpu.memory_space<vmem>>, vector<10x256xbf16>
    %1 = arith.extf %0 : vector<10x256xbf16> to vector<10x256xf32>
    %2 = vector.extract_strided_slice %1 {offsets = [0, 0], sizes = [10, 128], strides = [1, 1]} : vector<10x256xf32> to vector<10x128xf32>
    %3 = vector.extract_strided_slice %1 {offsets = [0, 128], sizes = [10, 128], strides = [1, 1]} : vector<10x256xf32> to vector<10x128xf32>
    %4 = arith.negf %2 : vector<10x128xf32>
    %5 = math.exp %4 : vector<10x128xf32>
    %cst = arith.constant 1.000000e+00 : f32
    %6 = vector.broadcast %cst : f32 to vector<10x128xf32>
    %7 = arith.addf %6, %5 : vector<10x128xf32>
    %8 = arith.divf %6, %7 : vector<10x128xf32>
    %9 = arith.mulf %2, %8 : vector<10x128xf32>
    %10 = arith.mulf %9, %3 : vector<10x128xf32>
    %cst_1 = arith.constant dense<0.000000e+00> : vector<10xf32>
    %11 = vector.multi_reduction <add>, %10, %cst_1 [1] : vector<10x128xf32> to vector<10xf32>
    %12 = vector.shape_cast %11 : vector<10xf32> to vector<10x1xf32>
    %cst_2 = arith.constant 1.280000e+02 : f32
    %13 = vector.broadcast %cst_2 : f32 to vector<10x1xf32>
    %14 = arith.divf %12, %13 : vector<10x1xf32>
    %15 = vector.broadcast %14 : vector<10x1xf32> to vector<10x128xf32>
    %16 = arith.subf %10, %15 : vector<10x128xf32>
    %17 = arith.mulf %16, %16 : vector<10x128xf32>
    %cst_3 = arith.constant dense<0.000000e+00> : vector<10xf32>
    %18 = vector.multi_reduction <add>, %17, %cst_3 [1] : vector<10x128xf32> to vector<10xf32>
    %19 = vector.shape_cast %18 : vector<10xf32> to vector<10x1xf32>
    %cst_4 = arith.constant 1.280000e+02 : f32
    %20 = vector.broadcast %cst_4 : f32 to vector<10x1xf32>
    %21 = arith.divf %19, %20 : vector<10x1xf32>
    %22 = vector.broadcast %14 : vector<10x1xf32> to vector<10x128xf32>
    %23 = arith.subf %10, %22 : vector<10x128xf32>
    %cst_5 = arith.constant 9.99999997E-7 : f32
    %24 = vector.broadcast %cst_5 : f32 to vector<10x1xf32>
    %25 = arith.addf %21, %24 : vector<10x1xf32>
    %26 = math.rsqrt %25 : vector<10x1xf32>
    %27 = vector.broadcast %26 : vector<10x1xf32> to vector<10x128xf32>
    %28 = arith.mulf %23, %27 : vector<10x128xf32>
    %c0_6 = arith.constant 0 : index
    %c0_7 = arith.constant 0 : index
    %29 = vector.load %arg2[%c0_6, %c0_7] : memref<1x128xf32, #tpu.memory_space<vmem>>, vector<1x128xf32>
    %30 = vector.broadcast %29 : vector<1x128xf32> to vector<10x128xf32>
    %31 = arith.mulf %28, %30 : vector<10x128xf32>
    %c0_8 = arith.constant 0 : index
    %c0_9 = arith.constant 0 : index
    %32 = vector.load %arg3[%c0_8, %c0_9] : memref<1x128xf32, #tpu.memory_space<vmem>>, vector<1x128xf32>
    %33 = vector.broadcast %32 : vector<1x128xf32> to vector<10x128xf32>
    %34 = arith.addf %31, %33 : vector<10x128xf32>
    %35 = arith.truncf %34 : vector<10x128xf32> to vector<10x128xbf16>
    %c0_10 = arith.constant 0 : index
    %c0_11 = arith.constant 0 : index
    %36 = vector.load %arg4[%c0_10, %c0_11] : memref<10x128xbf16, #tpu.memory_space<vmem>>, vector<10x128xbf16>
    tpu.vector_store %arg4[%c0_10, %c0_11], %35 {strides = array<i32>} : memref<10x128xbf16, #tpu.memory_space<vmem>>, vector<10x128xbf16>,
    return
  }
  func.func @transform_0(%arg0: i32) -> (i32, i32) {
    %c0_i32 = arith.constant 0 : i32
    %c0_i32_0 = arith.constant 0 : i32
    return %arg0, %c0_i32 : i32, i32
  }
  func.func @transform_1(%arg0: i32) -> (i32, i32) {
    %c0_i32 = arith.constant 0 : i32
    %c0_i32_0 = arith.constant 0 : i32
    %c0_i32_1 = arith.constant 0 : i32
    return %c0_i32, %c0_i32_0 : i32, i32
  }
  func.func @transform_2(%arg0: i32) -> (i32, i32) {
    %c0_i32 = arith.constant 0 : i32
    %c0_i32_0 = arith.constant 0 : i32
    %c0_i32_1 = arith.constant 0 : i32
    return %c0_i32, %c0_i32_0 : i32, i32
  }
  func.func @transform_3(%arg0: i32) -> (i32, i32) {
    %c0_i32 = arith.constant 0 : i32
    %c0_i32_0 = arith.constant 0 : i32
    return %arg0, %c0_i32 : i32, i32
  }
}

</mosaic_0001>

<bundles_post_ra>
// kernel: eva_x_forward.16
= control target key start
LH: loop header
LB: loop body
LE: loop exit
PB: predicated region body
PF: predicated region fallthrough
CT: control target
= control target key end

     0   :  { %vm22_vm0 = vcmask 392192   ;;  %vm24_vm1 = vcmask 386048   ;;  %v132_v1 = vmov 0.0   ;;  %vm101_vm2 = vcmask 388096   ;;  %s193_s1 = inlined_call_operand.vmem [shape: bf16[48,48], index: 1, kind: input, shape index: {}]   ;;  %s194_s2 = inlined_call_operand.vmem [shape: f32[1,48], index: 2, kind: input, shape index: {}]   ;;  %s195_s0 = inlined_call_operand.vmem [shape: bf16[10,48], index: 0, kind: input, shape index: {}]   ;;  %s196_s3 = inlined_call_operand.vmem [shape: bf16[10,48], index: 3, kind: input, shape index: {}]   ;;  %s197_s4 = inlined_call_operand.vmem [shape: bf16[10,48], index: 4, kind: output, shape index: {}]  }
   0x1   :  { %v129_v0 = vld [vmem:[%s193_s1 + $0x10] sm:$0xff]  ;;  %23 = vst.msk [vmem:[#allocation2] sm:$0xff] %vm22_vm0, %v132_v1  ;;  %v128_v2 = vld [vmem:[%s193_s1 + $0x8] sm:$0xff]  ;;  %v127_v3 = vld [vmem:[%s193_s1] sm:$0xff]  ;;  %vm103_vm3 = vcmask 385024  }
   0x2   :  { %25 = vst.msk [vmem:[#allocation2 + $0x8] sm:$0x3] %vm24_vm1, %v132_v1  ;;  %68 = vmatpush.bf16.msra.mxu0 %v129_v0  ;;  %v111_v4 = vld [vmem:[%s195_s0] sm:$0xf]  ;;  %v126_v5 = vld [vmem:[%s195_s0] sm:$0x10] }
   0x3   :  { %v112_v6 = vor.u32 %v126_v5, %v111_v4  ;;  %v93_v10 = vld [vmem:[%s196_s3] sm:$0xf]  ;;  %v94_v19 = vld [vmem:[%s196_s3 + $0x4] sm:$0x1] }
   0x4   :  { %v131_v12 = vld [vmem:[%s194_s2] ss:$0 sm:$0xff]  ;;  %v95_v14 = vunpack.c.l.bf16 %v93_v10  ;;  %v96_v21 = vunpack.c.l.bf16 %v94_v19 }
   0x6   :  { %69 = vmatpush.bf16.msra.mxu0 %v128_v2 }
   0x8   :  { %v26_v7 = vld [vmem:[#allocation2] sm:$0xff] }
   0x9   :  { %v27_v11 = vld [vmem:[#allocation2 + $0x8] sm:$0x3] }
   0xa   :  { %70 = vmatpush.bf16.msra.mxu0 %v127_v3 }
   0xd   :  { %125 = vmatmul.msk.bf16.vlgmr.msra.gmra.mxu0 %vm22_vm0, %v112_v6 }
  0x8a   :  { %v72_v8 = vpop.f32.mrf.mxu0 }
  0x8b   :  { %v77_v9 = vadd.f32 %v72_v8, %v26_v7 }
  0x8d   :  { %79 = vst.msk [vmem:[#allocation2] sm:$0xff] %vm22_vm0, %v77_v9 }
  0x92   :  { %v74_v13 = vpop.f32.mrf.mxu0 }
  0x93   :  { %v78_v15 = vadd.f32 %v74_v13, %v27_v11 }
  0x94   :  { %v85_v16 = vld [vmem:[#allocation2] sm:$0xff] }
  0x95   :  { %v91_v17 = vadd.f32 %v131_v12, %v85_v16  ;;  %81 = vst.msk [vmem:[#allocation2 + $0x8] sm:$0x3] %vm24_vm1, %v78_v15 }
  0x97   :  { %v97_v18 = vadd.f32 %v95_v14, %v91_v17 }
  0x99   :  { %v99_v20 = vpack.c.bf16 %v97_v18, %v97_v18 }
  0x9b   :  { %102 = vst.msk [vmem:[%s197_s4] sm:$0xf] %vm101_vm2, %v99_v20 }
  0x9c   :  { %v86_v22 = vld [vmem:[#allocation2 + $0x8] sm:$0x3] }
  0x9d   :  { %v92_v23 = vadd.f32 %v131_v12, %v86_v22 }
  0x9f   :  { %v98_v24 = vadd.f32 %v96_v21, %v92_v23 }
  0xa1   :  { %v100_v25 = vpack.c.bf16 %v98_v24, %v98_v24 }
  0xa3   :  { %104 = vst.msk [vmem:[%s197_s4 + $0x4] sm:$0x1] %vm103_vm3, %v100_v25 }

// kernel: eva_x_forward.13
= control target key start
LH: loop header
LB: loop body
LE: loop exit
PB: predicated region body
PF: predicated region fallthrough
CT: control target
= control target key end

     0   :  { %vm125_vm0 = vcmask 523264   ;;  %vm19_vm1 = vcmask 392192   ;;  %v237_v17 = vmov 0.0   ;;  %vm168_vm2 = vcmask 388096   ;;  %s303_s1 = inlined_call_operand.vmem [shape: bf16[192,48], index: 1, kind: input, shape index: {}]   ;;  %s304_s0 = inlined_call_operand.vmem [shape: bf16[8,192], index: 0, kind: input, shape index: {}]   ;;  %s305_s2 = inlined_call_operand.vmem [shape: f32[1,48], index: 2, kind: input, shape index: {}]   ;;  %s306_s3 = inlined_call_operand.vmem [shape: bf16[8,48], index: 3, kind: output, shape index: {}]  }
   0x1   :  { %v230_v0 = vld [vmem:[%s303_s1 + $0x38] sm:$0xff]  ;;  %v229_v2 = vld [vmem:[%s303_s1 + $0x30] sm:$0xff]  ;;  %v228_v4 = vld [vmem:[%s303_s1 + $0x28] sm:$0xff]  ;;  %20 = vst.msk [vmem:[#allocation2] sm:$0xff] %vm19_vm1, %v237_v17 }
   0x2   :  { %v234_v1 = vld [vmem:[%s303_s1 + $0x58] sm:$0xff]  ;;  %129 = vmatpush.bf16.msra.mxu0 %v230_v0  ;;  %v233_v3 = vld [vmem:[%s303_s1 + $0x50] sm:$0xff]  ;;  %v232_v5 = vld [vmem:[%s303_s1 + $0x48] sm:$0xff] }
   0x3   :  { %146 = vmatpush.bf16.msra.mxu1 %v234_v1  ;;  %v22_v6 = vld [vmem:[%s304_s0] sm:$0xff]  ;;  %v226_v10 = vld [vmem:[%s303_s1 + $0x18] sm:$0xff]  ;;  %v225_v12 = vld [vmem:[%s303_s1 + $0x10] sm:$0xff] }
   0x4   :  { %v227_v7 = vld [vmem:[%s303_s1 + $0x20] sm:$0xff]  ;;  %v49_v8 = vunpack.c.h.b16 %v22_v6  ;;  %v224_v13 = vld [vmem:[%s303_s1 + $0x8] sm:$0xff]  ;;  %v48_v14 = vunpack.c.l.b16 %v22_v6 }
   0x5   :  { %v231_v9 = vld [vmem:[%s303_s1 + $0x40] sm:$0xff] }
   0x6   :  { %130 = vmatpush.bf16.msra.mxu0 %v229_v2  ;;  %v51_v11 = vpack.c.b16 %v49_v8, %v49_v8  ;;  %v223_v15 = vld [vmem:[%s303_s1] sm:$0xff]  ;;  %v50_v16 = vpack.c.b16 %v48_v14, %v48_v14 }
   0x7   :  { %147 = vmatpush.bf16.msra.mxu1 %v233_v3  ;;  %v236_v25 = vld [vmem:[%s305_s2] ss:$0 sm:$0xff] }
   0x8   :  { %v21_v20 = vld [vmem:[#allocation2] sm:$0xff] }
   0xa   :  { %131 = vmatpush.bf16.msra.mxu0 %v228_v4 }
   0xb   :  { %148 = vmatpush.bf16.msra.mxu1 %v232_v5 }
   0xe   :  { %132 = vmatpush.bf16.msra.mxu0 %v227_v7 }
   0xf   :  { %149 = vmatpush.bf16.msra.mxu1 %v231_v9 }
  0x12   :  { %133 = vmatpush.bf16.msra.mxu0 %v226_v10  ;;  %222 = vmatmul.msk.bf16.vlgmr.msra.gmra.mxu1 %vm125_vm0, %v51_v11 }
  0x16   :  { %134 = vmatpush.bf16.msra.mxu0 %v225_v12 }
  0x1a   :  { %135 = vmatpush.bf16.msra.mxu0 %v224_v13 }
  0x1e   :  { %136 = vmatpush.bf16.msra.mxu0 %v223_v15 }
  0x21   :  { %137 = vmatmul.bf16.vlgmr.msra.gmra.mxu0 %v50_v16 }
  0x8f   :  { %v151_v18 = vpop.f32.mrf.mxu1 }
  0x97   :  { %v153_v19 = vpop.f32.mrf.mxu1 }
  0x9e   :  { %v138_v21 = vpop.f32.mrf.mxu0 }
  0x9f   :  { %v152_v22 = vadd.f32 %v151_v18, %v138_v21 }
  0xa1   :  { %v155_v23 = vadd.f32 %v152_v22, %v21_v20 }
  0xa3   :  { %157 = vst.msk [vmem:[#allocation2] sm:$0xff] %vm19_vm1, %v155_v23 }
  0xa6   :  { %v140_v24 = vpop.f32.mrf.mxu0 }
  0xaa   :  { %v161_v26 = vld [vmem:[#allocation2] sm:$0xff] }
  0xab   :  { %v166_v27 = vadd.f32 %v236_v25, %v161_v26 }
  0xad   :  { %v167_v28 = vpack.c.bf16 %v166_v27, %v166_v27 }
  0xaf   :  { %169 = vst.msk [vmem:[%s306_s3] sm:$0xf] %vm168_vm2, %v167_v28 }

// kernel: eva_x_forward.14
= control target key start
LH: loop header
LB: loop body
LE: loop exit
PB: predicated region body
PF: predicated region fallthrough
CT: control target
= control target key end

     0   :  { %vm25_vm0 = vcmask 392192   ;;  %vm29_vm1 = vcmask 386048   ;;  %v219_v6 = vmov 48.0   ;;  %vm166_vm9 = vcmask 1043456   ;;  %s313_s0 = inlined_call_operand.vmem [shape: bf16[10,48], index: 0, kind: input, shape index: {}]   ;;  %s314_s1 = inlined_call_operand.vmem [shape: f32[1,48], index: 1, kind: input, shape index: {}]   ;;  %s315_s2 = inlined_call_operand.vmem [shape: f32[1,48], index: 2, kind: input, shape index: {}]   ;;  %s316_s3 = inlined_call_operand.vmem [shape: bf16[48,144], index: 3, kind: input, shape index: {}]   ;;  %s317_s4 = inlined_call_operand.vmem [shape: f32[1,144], index: 4, kind: input, shape index: {}]   ;;  %s318_s5 = inlined_call_operand.vmem [shape: bf16[10,144], index: 5, kind: output, shape index: {}]  }
   0x1   :  { %v21_v0 = vld [vmem:[%s313_s0] sm:$0xf]  ;;  %v22_v2 = vld [vmem:[%s313_s0 + $0x4] sm:$0x1]  ;;  %213 = vrcp.f32 %v219_v6  ;;  %v209_v24 = vld [vmem:[%s316_s3 + $0x24] sm:$0xf0] }
   0x2   :  { %v23_v1 = vunpack.c.l.bf16 %v21_v0  ;;  %v24_v4 = vunpack.c.l.bf16 %v22_v2  ;;  %v196_v23 = vld [vmem:[%s316_s3 + $0x20] sm:$0xf]  ;;  %v208_v25 = vld [vmem:[%s316_s3 + $0x24] sm:$0xf]  ;;  %v198_v27 = vld [vmem:[%s316_s3 + $0x28] sm:$0xf0] }
   0x3   :  { %v197_v26 = vor.u32 %v209_v24, %v196_v23  ;;  %v201_v28 = vor.u32 %v208_v25, %v198_v27  ;;  %v188_v29 = vld [vmem:[%s316_s3 + $0x10] sm:$0xf]  ;;  %v207_v30 = vld [vmem:[%s316_s3 + $0x14] sm:$0xf0]  ;;  %v206_v31 = vld [vmem:[%s316_s3 + $0x14] sm:$0xf] }
   0x4   :  { %v26_v3 = vsel %vm25_vm0, %v23_v1, 0.0  ;;  %v30_v5 = vsel %vm29_vm1, %v24_v4, 0.0  ;;  %v189_v32 = vor.u32 %v207_v30, %v188_v29  ;;  %v190_v33 = vld [vmem:[%s316_s3 + $0x18] sm:$0xf0]  ;;  %v180_v35 = vld [vmem:[%s316_s3] sm:$0xf] }
   0x5   :  { %27 = vadd.xlane.f32.xlu0 %v26_v3  ;;  %141 = vmatpush.bf16.msra.mxu0 %v197_v26  ;;  %v193_v34 = vor.u32 %v206_v31, %v190_v33  ;;  %v205_v36 = vld [vmem:[%s316_s3 + $0x4] sm:$0xf0]  ;;  %v204_v37 = vld [vmem:[%s316_s3 + $0x4] sm:$0xf]  ;;  %v182_v40 = vld [vmem:[%s316_s3 + $0x8] sm:$0xf0] }
   0x6   :  { %155 = vmatpush.bf16.msra.mxu1 %v201_v28  ;;  %v181_v39 = vor.u32 %v205_v36, %v180_v35  ;;  %v185_v42 = vor.u32 %v204_v37, %v182_v40  ;;  %v211_v60 = vld [vmem:[%s314_s1] ss:$0 sm:$0xff]  ;;  %vm167_vm10 = vcmask 130052   ;;  %vm170_vm12 = vcmask 1040384  }
   0x7   :  { %v214_v7 = vpop.eup %213  ;;  %v97_v6 = vld [vmem:[%s317_s4] sm:$0x3]  ;;  %vm168_vm11 = vmor %vm167_vm10, %vm166_vm9  ;;  %vm171_vm13 = vcmask 126980  }
   0x8   :  { %v34_v8 = vmul.f32 48.0, %v214_v7  ;;  %vm38_vm2 = vweird.f32 %v214_v7  ;;  %vm172_vm14 = vmor %vm171_vm13, %vm170_vm12 }
   0x9   :  { %142 = vmatpush.bf16.msra.mxu0 %v189_v32 }
   0xa   :  { %v35_v9 = vsub.f32 1.0, %v34_v8  ;;  %156 = vmatpush.bf16.msra.mxu1 %v193_v34  ;;  %v100_v8 = vperm.slane %v97_v6, 1 }
   0xc   :  { %v36_v10 = vmul.f32 %v214_v7, %v35_v9 }
   0xd   :  { %31 = vadd.xlane.f32.xlu0 %v30_v5  ;;  %143 = vmatpush.bf16.msra.mxu0 %v181_v39 }
   0xe   :  { %v37_v11 = vadd.f32 %v214_v7, %v36_v10  ;;  %157 = vmatpush.bf16.msra.mxu1 %v185_v42 }
  0x10   :  { %v39_v12 = vsel %vm38_vm2, %v214_v7, %v37_v11  ;;  %v99_v7 = vperm.slane %v97_v6, 0 }
  0x78   :  { %v28_v13 = vpop.xlane.xlu0 %27 }
  0x79   :  { %v40_v14 = vmul.f32 %v39_v12, %v28_v13 }
  0x7b   :  { %v42_v15 = vsub.f32 %v23_v1, %v40_v14  ;;  %v212_v1 = vld [vmem:[%s315_s2] ss:$0 sm:$0xff] }
  0x7d   :  { %v44_v16 = vmul.f32 %v42_v15, %v42_v15 }
  0x7f   :  { %v46_v17 = vsel %vm25_vm0, %v44_v16, 0.0 }
  0x80   :  { %47 = vadd.xlane.f32.xlu1 %v46_v17  ;;  %v32_v18 = vpop.xlane.xlu0 %31 }
  0x81   :  { %v41_v19 = vmul.f32 %v39_v12, %v32_v18 }
  0x83   :  { %v43_v20 = vsub.f32 %v24_v4, %v41_v19 }
  0x85   :  { %v45_v21 = vmul.f32 %v43_v20, %v43_v20 }
  0x87   :  { %v49_v22 = vsel %vm29_vm1, %v45_v21, 0.0 }
  0x88   :  { %50 = vadd.xlane.f32.xlu1 %v49_v22 }
  0xf3   :  { %v48_v38 = vpop.xlane.xlu1 %47 }
  0xf4   :  { %v52_v41 = vmul.f32 %v48_v38, %v39_v12 }
  0xf6   :  { %v54_v43 = vadd.f32 1e-06, %v52_v41 }
  0xf8   :  { %215 = vrsqrt.f32 %v54_v43  ;;  %vm62_vm4 = vweird.f32 %v54_v43 }
  0xfb   :  { %v51_v44 = vpop.xlane.xlu1 %50 }
  0xfc   :  { %v53_v45 = vmul.f32 %v51_v44, %v39_v12 }
  0xfe   :  { %v216_v46 = vpop.eup %215  ;;  %v55_v47 = vadd.f32 1e-06, %v53_v45 }
  0xff   :  { %v57_v48 = vmul.f32 %v216_v46, %v54_v43  ;;  %vm63_vm3 = vweird.f32 %v216_v46 }
 0x100   :  { %217 = vrsqrt.f32 %v55_v47  ;;  %vm64_vm5 = vmor %vm62_vm4, %vm63_vm3  ;;  %vm72_vm7 = vweird.f32 %v55_v47 }
 0x101   :  { %v58_v49 = vmul.f32 %v216_v46, %v57_v48 }
 0x103   :  { %v59_v50 = vmul.f32 0.5, %v58_v49 }
 0x105   :  { %v60_v51 = vsub.f32 1.5, %v59_v50 }
 0x106   :  { %v218_v52 = vpop.eup %217 }
 0x107   :  { %v61_v53 = vmul.f32 %v216_v46, %v60_v51  ;;  %v67_v54 = vmul.f32 %v218_v52, %v55_v47  ;;  %vm73_vm6 = vweird.f32 %v218_v52 }
 0x108   :  { %vm74_vm8 = vmor %vm72_vm7, %vm73_vm6 }
 0x109   :  { %v68_v55 = vmul.f32 %v218_v52, %v67_v54  ;;  %v65_v56 = vsel %vm64_vm5, %v216_v46, %v61_v53 }
 0x10a   :  { %v76_v59 = vmul.f32 %v65_v56, %v42_v15 }
 0x10b   :  { %v69_v57 = vmul.f32 0.5, %v68_v55 }
 0x10c   :  { %v82_v0 = vmul.f32 %v211_v60, %v76_v59 }
 0x10d   :  { %v70_v58 = vsub.f32 1.5, %v69_v57 }
 0x10e   :  { %v88_v3 = vadd.f32 %v212_v1, %v82_v0 }
 0x10f   :  { %v71_v61 = vmul.f32 %v218_v52, %v70_v58 }
 0x111   :  { %v75_v62 = vsel %vm74_vm8, %v218_v52, %v71_v61 }
 0x112   :  { %v77_v63 = vmul.f32 %v75_v62, %v43_v20 }
 0x114   :  { %v83_v2 = vmul.f32 %v211_v60, %v77_v63 }
 0x116   :  { %v89_v4 = vadd.f32 %v212_v1, %v83_v2 }
 0x118   :  { %v90_v5 = vpack.c.bf16 %v89_v4, %v88_v3 }
 0x11a   :  { %202 = vmatmul.msk.bf16.vlgmr.msra.gmra.mxu0 %vm25_vm0, %v90_v5  ;;  %203 = vmatmul.msk.bf16.vlgmr.msra.gmra.mxu1 %vm25_vm0, %v90_v5 }
 0x197   :  { %v145_v9 = vpop.f32.mrf.mxu0  ;;  %v159_v10 = vpop.f32.mrf.mxu1 }
 0x198   :  { %v146_v11 = vadd.f32 %v145_v9, %v99_v7  ;;  %v160_v12 = vadd.f32 %v159_v10, %v100_v8 }
 0x19a   :  { %v164_v13 = vpack.c.bf16 %v160_v12, %v146_v11 }
 0x19c   :  { %169 = vst.msk [vmem:[%s318_s5] sm:$0xff] %vm168_vm11, %v164_v13 }
 0x19f   :  { %v147_v14 = vpop.f32.mrf.mxu0  ;;  %v161_v15 = vpop.f32.mrf.mxu1 }
 0x1a0   :  { %v148_v16 = vadd.f32 %v147_v14, %v99_v7  ;;  %v162_v17 = vadd.f32 %v161_v15, %v100_v8 }
 0x1a2   :  { %v165_v18 = vpack.c.bf16 %v162_v17, %v148_v16 }
 0x1a4   :  { %173 = vst.msk [vmem:[%s318_s5 + $0x8] sm:$0x11] %vm172_vm14, %v165_v18 }

// kernel: eva_x_forward.15
= control target key start
LH: loop header
LB: loop body
LE: loop exit
PB: predicated region body
PF: predicated region fallthrough
CT: control target
= control target key end

     0   :  { %s732_s9 = smov 0   ;;  %s852_s0 = inlined_call_operand.vmem [shape: f32[5,24], index: 0, kind: input, shape index: {}]   ;;  %s853_s1 = inlined_call_operand.vmem [shape: bf16[2,5,144], index: 1, kind: input, shape index: {}]   ;;  %s854_s2 = inlined_call_operand.vmem [shape: bf16[2,5,48], index: 2, kind: output, shape index: {}]  }
   0x1 LB: > { %s610_s10 = sadd.s32 4294967295, %s687_s9   ;;  %p614_p0 = scmp.ge.s32.totalorder %s687_s9, 1  ;;  %s687_s9 = sphi %s732_s9, %s12_s9  }
   0x2   : > { %p112_p1 = scmp.lt.s32.totalorder %s687_s9, 3 }
   0x4   : > { %p113_p2 = pnand %p614_p0, %p112_p1 }
   0x5   : > { %p133_p3 = scmp.lt.s32.totalorder (!%p113_p2), %s610_s10, 1  ;;  %s689_s15 = smov (!%p113_p2), 74  }
   0x6   : > { %116 = sbr.rel (%p113_p2) target bundleno = 1406 (0x57e), region = 28  ;;  %s690_s16 = smov (!%p113_p2), 86  }
   0x7   : > { %s691_s17 = smov (!%p113_p2), 6   ;;  %s692_s20 = smov (!%p113_p2), 36  }
   0x8   : > { %s693_s21 = smov (!%p113_p2), 48   ;;  %s694_s22 = smov (!%p113_p2), 116  }
   0x9   : > { %s695_s23 = smov (!%p113_p2), 110   ;;  %s696_s24 = smov (!%p113_p2), 50  }
   0xa   : > { %s697_s25 = smov (!%p113_p2), 62   ;;  %s698_s26 = smov (!%p113_p2), 98  }
   0xb   : > { %s856_s10 = smov (!%p133_p3, %s610_s10), 1  ;;  %v758_v3 = vld [vmem:[%s852_s0] sm:$0x1f]  ;;  %vm160_vm0 = vcmask 48128   ;;  %s699_s27 = smov 80   ;;  %vm186_vm1 = vcmask 97280  }
   0xc   : > { %s628_s11 = sshll.u32 %s856_s10, 3  ;;  %164 = vrot.lane.b32.xlu1 %v758_v3, %s692_s20  ;;  %s700_s28 = smov 122   ;;  %vm206_vm2 = vcmask 36864   ;;  %vm228_vm3 = vcmask 1041408   ;;  %vm229_vm4 = vcmask 1042432   ;;  %vm224_vm5 = vcmask 39936  }
   0xd   : > { %s137_s14 = scalar_lea.vmem %s853_s1, %s628_s11  ;;  %s701_s29 = smov 38   ;;  %vm418_vm6 = vcmask 64512   ;;  %vm546_vm7 = vcmask 195584   ;;  %vm548_vm8 = vcmask 293888   ;;  %vm551_vm9 = vcmask 387072  }
   0xe   : > { %v746_v0 = vld [vmem:[%s137_s14] sm:$0x77]  ;;  %s702_s30 = smov 60   ;;  %s703_s3 = smov 12   ;;  %vm552_vm10 = vsmask.f32 2304 }
   0xf   : > { %v749_v1 = vunpack.c.l.bf16 %v746_v0  ;;  %s704_s4 = smov 72   ;;  %s705_s5 = smov 84   ;;  %v220_v61 = vunpack.c.l.b16 %v746_v0  ;;  %vm553_vm11 = vmand %vm551_vm9, %vm552_vm10 }
  0x10   : > { %s706_s6 = smov 24   ;;  %s707_s7 = smov 68  }
  0x11   : > { %v151_v2 = vsub.f32 0.0, %v749_v1  ;;  %v248_v50 = vmul.f32 %v749_v1, %v758_v3  ;;  %v806_v62 = vpack.c.b16 %v220_v61, %v220_v61  ;;  %s708_s8 = smov 32   ;;  %s709_s11 = smov 44  }
  0x12   : > { %s710_s12 = smov 56   ;;  %s711_s13 = smov 104  }
  0x13   : > { %168 = vrot.lane.b32.xlu0 %v151_v2, %s689_s15  ;;  %s712_s14 = smov 92   ;;  %s617_s18 = sshll.u32 %s856_s10, 2 }
  0x1b   : > { %171 = vrot.lane.b32.xlu0 %v749_v1, %s690_s16 }
  0x23   : > { %157 = vrot.lane.b32.xlu0 %v749_v1, %s691_s17  ;;  %s716_s17 = smov 124  }
  0x2b   : > { %269 = vrot.lane.b32.xlu0 %v749_v1, %s689_s15  ;;  %s714_s15 = smov 20  }
  0x33   : > { %360 = vrot.lane.b32.xlu0 %v151_v2, %s696_s24 }
  0x3b   : > { %463 = vrot.lane.b32.xlu0 %v749_v1, %s696_s24 }
  0x43   : > { %443 = vrot.lane.b32.xlu0 %v151_v2, %s690_s16  ;;  %s715_s16 = smov 8  }
  0x4b   : > { %262 = vrot.lane.b32.xlu0 %v758_v3, %s693_s21 }
  0x7e   : > { %v165_v8 = vpop.permute.xlu1 %164 }
  0x7f   : > { %v167_v9 = vmul.f32 %v165_v8, %v749_v1 }
  0x85   : > { %v169_v4 = vpop.permute.xlu0 %168 }
  0x8d   : > { %v172_v5 = vpop.permute.xlu0 %171 }
  0x8e   : > { %v174_v6 = vsel %vm160_vm0, %v169_v4, %v172_v5 }
  0x8f   : > { %v175_v7 = vmul.f32 %v174_v6, %v758_v3 }
  0x91   : > { %177 = vrot.lane.b32.xlu1 %v175_v7, %s693_s21 }
  0x95   : > { %v158_v15 = vpop.permute.xlu0 %157 }
  0x99   : > { %147 = vrot.lane.b32.xlu1 %v758_v3, %s694_s22 }
  0x9d   : > { %v270_v23 = vpop.permute.xlu0 %269 }
  0xa1   : > { %249 = vrot.lane.b32.xlu1 %v151_v2, %s695_s23 }
  0xa5   : > { %v361_v31 = vpop.permute.xlu0 %360 }
  0xa9   : > { %363 = vrot.lane.b32.xlu1 %v749_v1, %s697_s25 }
  0xad   : > { %v464_v36 = vpop.permute.xlu0 %463 }
  0xb1   : > { %343 = vrot.lane.b32.xlu1 %v151_v2, %s698_s26 }
  0xb5   : > { %v444_v40 = vpop.permute.xlu0 %443 }
  0xb9   : > { %446 = vrot.lane.b32.xlu1 %v749_v1, %s698_s26 }
  0xbd   : > { %v263_v42 = vpop.permute.xlu0 %262 }
  0xbe   : > { %v265_v43 = vmul.f32 %v263_v42, %v749_v1 }
 0x103   : > { %v178_v10 = vpop.permute.xlu1 %177 }
 0x104   : > { %v180_v11 = vadd.f32 %v178_v10, %v167_v9 }
 0x106   : > { %v182_v12 = vpack.c.bf16 %v180_v11, %v180_v11 }
 0x108   : > { %184 = vrot.lane.b32.xlu2 %v182_v12, %s699_s27 }
 0x10b   : > { %v148_v16 = vpop.permute.xlu1 %147 }
 0x10c   : > { %v150_v18 = vmul.f32 %v148_v16, %v749_v1 }
 0x110   : > { %153 = vrot.lane.b32.xlu2 %v151_v2, %s700_s28 }
 0x113   : > { %v250_v27 = vpop.permute.xlu1 %249 }
 0x118   : > { %266 = vrot.lane.b32.xlu2 %v151_v2, %s697_s25 }
 0x11b   : > { %v364_v32 = vpop.permute.xlu1 %363 }
 0x11c   : > { %v366_v33 = vsel %vm160_vm0, %v361_v31, %v364_v32 }
 0x11d   : > { %v367_v34 = vmul.f32 %v366_v33, %v758_v3 }
 0x120   : > { %252 = vrot.lane.b32.xlu2 %v749_v1, %s700_s28 }
 0x123   : > { %v344_v39 = vpop.permute.xlu1 %343 }
 0x128   : > { %460 = vrot.lane.b32.xlu2 %v151_v2, %s701_s29 }
 0x12b   : > { %v447_v41 = vpop.permute.xlu1 %446 }
 0x12c   : > { %v449_v57 = vsel %vm160_vm0, %v444_v40, %v447_v41 }
 0x12d   : > { %v450_v58 = vmul.f32 %v449_v57, %v758_v3  ;;  %v412_v57 = vunpack.c.h.b16 %v746_v0 }
 0x130   : > { %346 = vrot.lane.b32.xlu2 %v749_v1, %s695_s23 }
 0x162   : > { %v185_v13 = vpop.permute.xlu2 %184 }
 0x163   : > { %v191_v14 = vsel %vm186_vm1, %v185_v13, 0 }
 0x164   : > { %200 = vmatpush.bf16.xpose.msra.mxu0 %v191_v14 }
 0x16a   : > { %v154_v17 = vpop.permute.xlu2 %153 }
 0x16b   : > { %v161_v19 = vsel %vm160_vm0, %v154_v17, %v158_v15 }
 0x16c   : > { %v162_v20 = vmul.f32 %v161_v19, %v758_v3 }
 0x16e   : > { %v163_v21 = vadd.f32 %v162_v20, %v150_v18 }
 0x170   : > { %v181_v22 = vpack.c.bf16 %v163_v21, %v163_v21 }
 0x172   : > { %v267_v24 = vpop.permute.xlu2 %266  ;;  %618 = vmatmul.msk.bf16.vlgmr.msra.gmra.mxu0 %vm186_vm1, %v181_v22 }
 0x173   : > { %v272_v25 = vsel %vm160_vm0, %v267_v24, %v270_v23 }
 0x174   : > { %v273_v26 = vmul.f32 %v272_v25, %v758_v3 }
 0x176   : > { %275 = vrot.lane.b32.xlu1 %v273_v26, %s702_s30 }
 0x17a   : > { %v253_v28 = vpop.permute.xlu2 %252 }
 0x17b   : > { %v255_v29 = vsel %vm160_vm0, %v250_v27, %v253_v28 }
 0x17c   : > { %v256_v30 = vmul.f32 %v255_v29, %v758_v3 }
 0x17e   : > { %258 = vrot.lane.b32.xlu0 %v256_v30, %s703_s3  ;;  %356 = vrot.lane.b32.xlu1 %v758_v3, %s702_s30 }
 0x182   : > { %v461_v35 = vpop.permute.xlu2 %460 }
 0x183   : > { %v466_v37 = vsel %vm160_vm0, %v461_v35, %v464_v36 }
 0x184   : > { %v467_v38 = vmul.f32 %v466_v37, %v758_v3 }
 0x186   : > { %456 = vrot.lane.b32.xlu0 %v758_v3, %s704_s4  ;;  %369 = vrot.lane.b32.xlu1 %v367_v34, %s704_s4 }
 0x18a   : > { %v347_v46 = vpop.permute.xlu2 %346 }
 0x18b   : > { %v349_v47 = vsel %vm160_vm0, %v344_v39, %v347_v46 }
 0x18c   : > { %v350_v49 = vmul.f32 %v349_v47, %v758_v3 }
 0x18e   : > { %469 = vrot.lane.b32.xlu0 %v467_v38, %s705_s5  ;;  %339 = vrot.lane.b32.xlu1 %v758_v3, %s703_s3 }
 0x196   : > { %439 = vrot.lane.b32.xlu0 %v758_v3, %s706_s6  ;;  %352 = vrot.lane.b32.xlu1 %v350_v49, %s706_s6 }
 0x1e8   : > { %v276_v44 = vpop.permute.xlu1 %275 }
 0x1e9   : > { %v278_v45 = vadd.f32 %v276_v44, %v265_v43 }
 0x1eb   : > { %v280_v48 = vpack.c.bf16 %v278_v45, %v278_v45 }
 0x1ed   : > { %285 = vrot.lane.b32.xlu0 %v280_v48, %s707_s7 }
 0x1ef   : > { %v202_v51 = vpop.f32.mrf.mxu0 }
 0x1f0   : > { %v259_v52 = vpop.permute.xlu0 %258  ;;  %v207_v53 = vsel %vm206_vm2, %v202_v51, -inf  ;;  %v357_v5 = vpop.permute.xlu1 %356 }
 0x1f1   : > { %v261_v54 = vadd.f32 %v259_v52, %v248_v50  ;;  %208 = vmax.xlane.f32.xlu2 %v207_v53  ;;  %v359_v3 = vmul.f32 %v357_v5, %v749_v1 }
 0x1f3   : > { %v279_v55 = vpack.c.bf16 %v261_v54, %v261_v54 }
 0x1f5   : > { %282 = vrot.lane.b32.xlu0 %v279_v55, %s694_s22  ;;  %s141_s22 = scalar_lea.vmem %s854_s2, %s617_s18 }
 0x1f7   : > { %v204_v56 = vpop.f32.mrf.mxu0 }
 0x1f8   : > { %v457_v59 = vpop.permute.xlu0 %456  ;;  %v370_v7 = vpop.permute.xlu1 %369 }
 0x1f9   : > { %v459_v60 = vmul.f32 %v457_v59, %v749_v1  ;;  %v372_v8 = vadd.f32 %v370_v7, %v359_v3 }
 0x1fb   : > { %v374_v9 = vpack.c.bf16 %v372_v8, %v372_v8 }
 0x1fd   : > { %222 = vrot.lane.b32.xlu0 %v806_v62, %s708_s8 }
 0x200   : > { %v470_v63 = vpop.permute.xlu0 %469  ;;  %v340_v12 = vpop.permute.xlu1 %339 }
 0x201   : > { %v472_v2 = vadd.f32 %v470_v63, %v459_v60  ;;  %v342_v15 = vmul.f32 %v340_v12, %v749_v1 }
 0x203   : > { %v474_v4 = vpack.c.bf16 %v472_v2, %v472_v2 }
 0x205   : > { %479 = vrot.lane.b32.xlu0 %v474_v4, %s709_s11 }
 0x208   : > { %v440_v6 = vpop.permute.xlu0 %439  ;;  %v353_v19 = vpop.permute.xlu1 %352 }
 0x209   : > { %452 = vrot.lane.b32.xlu2 %v450_v58, %s692_s20  ;;  %v442_v18 = vmul.f32 %v440_v6, %v749_v1  ;;  %v355_v20 = vadd.f32 %v353_v19, %v342_v15  ;;  %v713_v1 = vmov 65535   ;;  %v413_v58 = vpack.c.b16 %v412_v57, %v412_v57 }
 0x20a   : > { %v230_v30 = vsel %vm228_vm3, 4294967295, %v713_v1 }
 0x20b   : > { %v373_v22 = vpack.c.bf16 %v355_v20, %v355_v20  ;;  %v816_v31 = vsel %vm229_vm4, %v230_v30, 0 }
 0x211   : > { %379 = vrot.lane.b32.xlu2 %v374_v9, %s710_s12 }
 0x219   : > { %376 = vrot.lane.b32.xlu2 %v373_v22, %s711_s13 }
 0x25f   : > { %v286_v10 = vpop.permute.xlu0 %285 }
 0x260   : > { %v291_v11 = vsel %vm186_vm1, %v286_v10, 0 }
 0x261   : > { %300 = vmatpush.bf16.xpose.msra.mxu2 %v291_v11 }
 0x264   : > { %v209_v13 = vpop.xlane.xlu2 %208 }
 0x265   : > { %v210_v14 = vsub.f32 %v202_v51, %v209_v13 }
 0x267   : > { %v211_v16 = vmul.f32 1.442695, %v210_v14  ;;  %v283_v17 = vpop.permute.xlu0 %282 }
 0x268   : > { %620 = vmatmul.msk.bf16.vlgmr.msra.gmra.mxu2 %vm186_vm1, %v283_v17 }
 0x269   : > { %665 = vpow2.f32 %v211_v16 }
 0x26c   : > { %v453_v21 = vpop.permute.xlu2 %452 }
 0x26d   : > { %v455_v23 = vadd.f32 %v453_v21, %v442_v18 }
 0x26f   : > { %v666_v24 = vpop.eup %665  ;;  %v473_v25 = vpack.c.bf16 %v455_v23, %v455_v23  ;;  %v223_v27 = vpop.permute.xlu0 %222 }
 0x270   : > { %v213_v26 = vsel %vm206_vm2, %v666_v24, 0.0  ;;  %v233_v32 = vand.u32 %v816_v31, %v223_v27 }
 0x271   : > { %214 = vadd.xlane.f32.xlu1 %v213_v26  ;;  %476 = vrot.lane.b32.xlu0 %v473_v25, %s712_s14 }
 0x272   : > { %242 = vmatpush.bf16.msra.mxu1 %v233_v32 }
 0x274   : > { %v380_v33 = vpop.permute.xlu2 %379 }
 0x275   : > { %v385_v34 = vsel %vm186_vm1, %v380_v33, 0 }
 0x276   : > { %394 = vmatpush.bf16.xpose.msrb.mxu1 %v385_v34 }
 0x277   : > { %v480_v28 = vpop.permute.xlu0 %479 }
 0x278   : > { %v485_v29 = vsel %vm186_vm1, %v480_v28, 0 }
 0x279   : > { %494 = vmatpush.bf16.xpose.msrb.mxu0 %v485_v29 }
 0x27c   : > { %v377_v43 = vpop.permute.xlu2 %376 }
 0x2e3   : > { %v477_v35 = vpop.permute.xlu0 %476 }
 0x2e4   : > { %v215_v36 = vpop.xlane.xlu1 %214  ;;  %624 = vmatmul.msk.bf16.vlgmr.msrb.gmra.mxu0 %vm186_vm1, %v477_v35 }
 0x2e5   : > { %667 = vrcp.f32 %v215_v36  ;;  %v554_v36 = vld [vmem:[%s141_s22] sm:$0x7] }
 0x2eb   : > { %v668_v37 = vpop.eup %667  ;;  %v302_v38 = vpop.f32.mrf.mxu2 }
 0x2ec   : > { %v306_v39 = vsel %vm206_vm2, %v302_v38, -inf  ;;  %v217_v40 = vmul.f32 %v668_v37, %v666_v24 }
 0x2ed   : > { %307 = vmax.xlane.f32.xlu2 %v306_v39 }
 0x2ee   : > { %v218_v41 = vpack.c.bf16 %v217_v40, %v217_v40 }
 0x2f0   : > { %619 = vmatmul.msk.bf16.vlgmr.msra.gmra.mxu1 %vm224_vm5, %v218_v41 }
 0x2f3   : > { %v304_v42 = vpop.f32.mrf.mxu2 }
 0x300   : > { %622 = vmatmul.msk.bf16.vlgmr.msrb.gmra.mxu1 %vm186_vm1, %v377_v43 }
 0x360   : > { %v308_v44 = vpop.xlane.xlu2 %307 }
 0x361   : > { %v309_v45 = vsub.f32 %v302_v38, %v308_v44  ;;  %v496_v46 = vpop.f32.mrf.mxu0 }
 0x362   : > { %v500_v47 = vsel %vm206_vm2, %v496_v46, -inf }
 0x363   : > { %v310_v48 = vmul.f32 1.442695, %v309_v45  ;;  %501 = vmax.xlane.f32.xlu1 %v500_v47 }
 0x365   : > { %669 = vpow2.f32 %v310_v48 }
 0x369   : > { %v498_v49 = vpop.f32.mrf.mxu0 }
 0x36b   : > { %v670_v50 = vpop.eup %669 }
 0x36c   : > { %v312_v51 = vsel %vm206_vm2, %v670_v50, 0.0 }
 0x36d   : > { %v826_v52 = vpop.f32.mrf.mxu1  ;;  %313 = vadd.xlane.f32.xlu1 %v312_v51 }
 0x375   : > { %v246_v53 = vpop.f32.mrf.mxu1 }
 0x37d   : > { %v396_v54 = vpop.f32.mrf.mxu1 }
 0x37e   : > { %v400_v55 = vsel %vm206_vm2, %v396_v54, -inf }
 0x37f   : > { %401 = vmax.xlane.f32.xlu0 %v400_v55 }
 0x385   : > { %v398_v56 = vpop.f32.mrf.mxu1 }
 0x386   : > { %318 = vrot.lane.b32.xlu1 %v806_v62, %s714_s15 }
 0x38e   : > { %416 = vrot.lane.b32.xlu1 %v413_v58, %s715_s16 }
 0x3d6   : > { %v502_v59 = vpop.xlane.xlu1 %501 }
 0x3d7   : > { %v503_v60 = vsub.f32 %v496_v46, %v502_v59 }
 0x3d9   : > { %v504_v61 = vmul.f32 1.442695, %v503_v60 }
 0x3db   : > { %671 = vpow2.f32 %v504_v61 }
 0x3e0   : > { %v314_v4 = vpop.xlane.xlu1 %313 }
 0x3e1   : > { %v672_v63 = vpop.eup %671  ;;  %673 = vrcp.f32 %v314_v4 }
 0x3e2   : > { %v506_v2 = vsel %vm206_vm2, %v672_v63, 0.0 }
 0x3e3   : > { %507 = vadd.xlane.f32.xlu0 %v506_v2 }
 0x3e7   : > { %v674_v3 = vpop.eup %673 }
 0x3e8   : > { %v316_v8 = vmul.f32 %v674_v3, %v670_v50 }
 0x3ea   : > { %v317_v10 = vpack.c.bf16 %v316_v8, %v316_v8 }
 0x3f2   : > { %v402_v5 = vpop.xlane.xlu0 %401 }
 0x3f3   : > { %v403_v6 = vsub.f32 %v396_v54, %v402_v5 }
 0x3f5   : > { %v404_v7 = vmul.f32 1.442695, %v403_v6 }
 0x3f7   : > { %675 = vpow2.f32 %v404_v7  ;;  %512 = vrot.lane.b32.xlu0 %v413_v58, %s716_s17 }
 0x3f8   : > { %v319_v0 = vpop.permute.xlu1 %318 }
 0x3f9   : > { %v324_v9 = vand.u32 %v319_v0, %v816_v31 }
 0x3fb   : > { %333 = vmatpush.bf16.msra.mxu3 %v324_v9 }
 0x3fd   : > { %v676_v11 = vpop.eup %675 }
 0x3fe   : > { %621 = vmatmul.msk.bf16.vlgmr.msra.gmra.mxu3 %vm224_vm5, %v317_v10  ;;  %v406_v12 = vsel %vm206_vm2, %v676_v11, 0.0 }
 0x3ff   : > { %407 = vadd.xlane.f32.xlu2 %v406_v12 }
 0x400   : > { %v417_v20 = vpop.permute.xlu1 %416 }
 0x417   : > { %414 = vrot.lane.b32.xlu2 %v806_v62, %s715_s16 }
 0x456   : > { %v508_v13 = vpop.xlane.xlu0 %507 }
 0x457   : > { %677 = vrcp.f32 %v508_v13 }
 0x45d   : > { %v678_v14 = vpop.eup %677 }
 0x45e   : > { %v510_v15 = vmul.f32 %v678_v14, %v672_v63 }
 0x460   : > { %v511_v18 = vpack.c.bf16 %v510_v15, %v510_v15 }
 0x469   : > { %v513_v16 = vpop.permute.xlu0 %512 }
 0x46a   : > { %v518_v17 = vand.u32 %v513_v16, %v816_v31 }
 0x46c   : > { %527 = vmatpush.bf16.msrb.mxu2 %v518_v17 }
 0x46f   : > { %625 = vmatmul.msk.bf16.vlgmr.msrb.gmra.mxu2 %vm224_vm5, %v511_v18 }
 0x472   : > { %v408_v19 = vpop.xlane.xlu2 %407 }
 0x473   : > { %679 = vrcp.f32 %v408_v19 }
 0x479   : > { %v680_v21 = vpop.eup %679 }
 0x47a   : > { %v415_v22 = vpop.permute.xlu2 %414  ;;  %v410_v23 = vmul.f32 %v680_v21, %v676_v11 }
 0x47b   : > { %v419_v62 = vsel %vm418_vm6, %v415_v22, %v417_v20 }
 0x47c   : > { %v424_v24 = vand.u32 %v419_v62, %v816_v31  ;;  %v411_v25 = vpack.c.bf16 %v410_v23, %v410_v23 }
 0x47e   : > { %433 = vmatpush.bf16.msrb.mxu3 %v424_v24 }
 0x481   : > { %v335_v26 = vpop.f32.mrf.mxu3  ;;  %623 = vmatmul.msk.bf16.vlgmr.msrb.gmra.mxu3 %vm224_vm5, %v411_v25 }
 0x482   : > { %534 = vrot.lane.b32.xlu1 %v335_v26, %s703_s3 }
 0x489   : > { %v337_v27 = vpop.f32.mrf.mxu3 }
 0x4f2   : > { %v529_v28 = vpop.f32.mrf.mxu2 }
 0x4f3   : > { %542 = vrot.lane.b32.xlu2 %v529_v28, %s692_s20 }
 0x4f4   : > { %v535_v32 = vpop.permute.xlu1 %534 }
 0x4f5   : > { %v545_v31 = vsel %vm186_vm1, %v826_v52, %v535_v32 }
 0x4fa   : > { %v531_v29 = vpop.f32.mrf.mxu2 }
 0x504   : > { %v435_v1 = vpop.f32.mrf.mxu3 }
 0x505   : > { %538 = vrot.lane.b32.xlu1 %v435_v1, %s706_s6 }
 0x50c   : > { %v437_v30 = vpop.f32.mrf.mxu3 }
 0x54d   : > { %v543_v34 = vpop.permute.xlu2 %542 }
 0x577   : > { %v539_v33 = vpop.permute.xlu1 %538 }
 0x578   : > { %v547_v35 = vsel %vm546_vm7, %v545_v31, %v539_v33 }
 0x579   : > { %v549_v37 = vsel %vm548_vm8, %v547_v35, %v543_v34 }
 0x57a   : > { %v550_v38 = vpack.c.bf16 %v549_v37, %v549_v37 }
 0x57c   : > { %v555_v39 = vsel %vm553_vm11, %v550_v38, %v554_v36 }
 0x57d   : > { %556 = vst [vmem:[%s141_s22] sm:$0x7] %v555_v39 }
 0x57e PF: > { %s12_s9 = sadd.s32 1, %s687_s9  }
 0x57f   : > { %p9_p4 = scmp.ge.s32.totalorder %s12_s9, 4  }
 0x581   :  { %11 = sbr.rel (!%p9_p4) target bundleno = 1 (0x1), region = 58 }

// kernel: eva_x_forward.19
= control target key start
LH: loop header
LB: loop body
LE: loop exit
PB: predicated region body
PF: predicated region fallthrough
CT: control target
= control target key end

     0   :  { %vm21_vm0 = vcmask 392192   ;;  %v193_v2 = vmov 0.0   ;;  %vm23_vm1 = vcmask 386048   ;;  %vm138_vm2 = vcmask 388096   ;;  %s266_s1 = inlined_call_operand.vmem [shape: bf16[128,48], index: 1, kind: input, shape index: {}]   ;;  %s267_s2 = inlined_call_operand.vmem [shape: f32[1,48], index: 2, kind: input, shape index: {}]   ;;  %s268_s0 = inlined_call_operand.vmem [shape: bf16[10,128], index: 0, kind: input, shape index: {}]   ;;  %s269_s3 = inlined_call_operand.vmem [shape: bf16[10,48], index: 3, kind: input, shape index: {}]   ;;  %s270_s4 = inlined_call_operand.vmem [shape: bf16[10,48], index: 4, kind: output, shape index: {}]  }
   0x1   :  { %v190_v0 = vld [vmem:[%s266_s1 + $0x38] sm:$0xff]  ;;  %v189_v1 = vld [vmem:[%s266_s1 + $0x30] sm:$0xff]  ;;  %22 = vst.msk [vmem:[#allocation2] sm:$0xff] %vm21_vm0, %v193_v2  ;;  %v188_v3 = vld [vmem:[%s266_s1 + $0x28] sm:$0xff]  ;;  %vm140_vm3 = vcmask 385024  }
   0x2   :  { %99 = vmatpush.bf16.msra.mxu0 %v190_v0  ;;  %v187_v4 = vld [vmem:[%s266_s1 + $0x20] sm:$0xff]  ;;  %v186_v5 = vld [vmem:[%s266_s1 + $0x18] sm:$0xff]  ;;  %v185_v6 = vld [vmem:[%s266_s1 + $0x10] sm:$0xff]  ;;  %24 = vst.msk [vmem:[#allocation2 + $0x8] sm:$0x3] %vm23_vm1, %v193_v2 }
   0x3   :  { %v184_v7 = vld [vmem:[%s266_s1 + $0x8] sm:$0xff]  ;;  %v183_v8 = vld [vmem:[%s266_s1] sm:$0xff] }
   0x4   :  { %v148_v9 = vld [vmem:[%s268_s0] sm:$0xf]  ;;  %v182_v10 = vld [vmem:[%s268_s0] sm:$0x10] }
   0x5   :  { %v149_v11 = vor.u32 %v182_v10, %v148_v9  ;;  %v130_v15 = vld [vmem:[%s269_s3] sm:$0xf]  ;;  %v131_v24 = vld [vmem:[%s269_s3 + $0x4] sm:$0x1] }
   0x6   :  { %100 = vmatpush.bf16.msra.mxu0 %v189_v1  ;;  %v192_v17 = vld [vmem:[%s267_s2] ss:$0 sm:$0xff]  ;;  %v132_v19 = vunpack.c.l.bf16 %v130_v15  ;;  %v133_v26 = vunpack.c.l.bf16 %v131_v24 }
   0x8   :  { %v25_v12 = vld [vmem:[#allocation2] sm:$0xff] }
   0x9   :  { %v26_v16 = vld [vmem:[#allocation2 + $0x8] sm:$0x3] }
   0xa   :  { %101 = vmatpush.bf16.msra.mxu0 %v188_v3 }
   0xe   :  { %102 = vmatpush.bf16.msra.mxu0 %v187_v4 }
  0x12   :  { %103 = vmatpush.bf16.msra.mxu0 %v186_v5 }
  0x16   :  { %104 = vmatpush.bf16.msra.mxu0 %v185_v6 }
  0x1a   :  { %105 = vmatpush.bf16.msra.mxu0 %v184_v7 }
  0x1e   :  { %106 = vmatpush.bf16.msra.mxu0 %v183_v8 }
  0x21   :  { %107 = vmatmul.bf16.vlgmr.msra.gmra.mxu0 %v149_v11 }
  0x9e   :  { %v108_v13 = vpop.f32.mrf.mxu0 }
  0x9f   :  { %v113_v14 = vadd.f32 %v108_v13, %v25_v12 }
  0xa1   :  { %116 = vst.msk [vmem:[#allocation2] sm:$0xff] %vm21_vm0, %v113_v14 }
  0xa6   :  { %v110_v18 = vpop.f32.mrf.mxu0 }
  0xa7   :  { %v114_v20 = vadd.f32 %v110_v18, %v26_v16 }
  0xa8   :  { %v122_v21 = vld [vmem:[#allocation2] sm:$0xff] }
  0xa9   :  { %v128_v22 = vadd.f32 %v192_v17, %v122_v21  ;;  %118 = vst.msk [vmem:[#allocation2 + $0x8] sm:$0x3] %vm23_vm1, %v114_v20 }
  0xab   :  { %v134_v23 = vadd.f32 %v132_v19, %v128_v22 }
  0xad   :  { %v136_v25 = vpack.c.bf16 %v134_v23, %v134_v23 }
  0xaf   :  { %139 = vst.msk [vmem:[%s270_s4] sm:$0xf] %vm138_vm2, %v136_v25 }
  0xb0   :  { %v123_v27 = vld [vmem:[#allocation2 + $0x8] sm:$0x3] }
  0xb1   :  { %v129_v28 = vadd.f32 %v192_v17, %v123_v27 }
  0xb3   :  { %v135_v29 = vadd.f32 %v133_v26, %v129_v28 }
  0xb5   :  { %v137_v30 = vpack.c.bf16 %v135_v29, %v135_v29 }
  0xb7   :  { %141 = vst.msk [vmem:[%s270_s4 + $0x4] sm:$0x1] %vm140_vm3, %v137_v30 }

// kernel: eva_x_forward.17
= control target key start
LH: loop header
LB: loop body
LE: loop exit
PB: predicated region body
PF: predicated region fallthrough
CT: control target
= control target key end

     0   :  { %vm25_vm0 = vcmask 392192   ;;  %vm29_vm1 = vcmask 386048   ;;  %v213_v6 = vmov 48.0   ;;  %s307_s0 = inlined_call_operand.vmem [shape: bf16[10,48], index: 0, kind: input, shape index: {}]   ;;  %s308_s1 = inlined_call_operand.vmem [shape: f32[1,48], index: 1, kind: input, shape index: {}]   ;;  %s309_s2 = inlined_call_operand.vmem [shape: f32[1,48], index: 2, kind: input, shape index: {}]   ;;  %s310_s3 = inlined_call_operand.vmem [shape: bf16[48,256], index: 3, kind: input, shape index: {}]   ;;  %s311_s4 = inlined_call_operand.vmem [shape: f32[1,256], index: 4, kind: input, shape index: {}]   ;;  %s312_s5 = inlined_call_operand.vmem [shape: bf16[10,256], index: 5, kind: output, shape index: {}]  }
   0x1   :  { %v21_v0 = vld [vmem:[%s307_s0] sm:$0xf]  ;;  %v22_v2 = vld [vmem:[%s307_s0 + $0x4] sm:$0x1]  ;;  %207 = vrcp.f32 %v213_v6  ;;  %v203_v24 = vld [vmem:[%s310_s3 + $0x24] sm:$0xf0] }
   0x2   :  { %v23_v1 = vunpack.c.l.bf16 %v21_v0  ;;  %v24_v4 = vunpack.c.l.bf16 %v22_v2  ;;  %v190_v23 = vld [vmem:[%s310_s3 + $0x20] sm:$0xf]  ;;  %v202_v25 = vld [vmem:[%s310_s3 + $0x24] sm:$0xf]  ;;  %v192_v27 = vld [vmem:[%s310_s3 + $0x28] sm:$0xf0] }
   0x3   :  { %v191_v26 = vor.u32 %v203_v24, %v190_v23  ;;  %v195_v28 = vor.u32 %v202_v25, %v192_v27  ;;  %v182_v29 = vld [vmem:[%s310_s3 + $0x10] sm:$0xf]  ;;  %v201_v30 = vld [vmem:[%s310_s3 + $0x14] sm:$0xf0]  ;;  %v200_v31 = vld [vmem:[%s310_s3 + $0x14] sm:$0xf] }
   0x4   :  { %v26_v3 = vsel %vm25_vm0, %v23_v1, 0.0  ;;  %v30_v5 = vsel %vm29_vm1, %v24_v4, 0.0  ;;  %v183_v32 = vor.u32 %v201_v30, %v182_v29  ;;  %v184_v33 = vld [vmem:[%s310_s3 + $0x18] sm:$0xf0]  ;;  %v174_v35 = vld [vmem:[%s310_s3] sm:$0xf] }
   0x5   :  { %27 = vadd.xlane.f32.xlu0 %v26_v3  ;;  %141 = vmatpush.bf16.msra.mxu0 %v191_v26  ;;  %v187_v34 = vor.u32 %v200_v31, %v184_v33  ;;  %v199_v36 = vld [vmem:[%s310_s3 + $0x4] sm:$0xf0]  ;;  %v198_v37 = vld [vmem:[%s310_s3 + $0x4] sm:$0xf]  ;;  %v176_v40 = vld [vmem:[%s310_s3 + $0x8] sm:$0xf0] }
   0x6   :  { %155 = vmatpush.bf16.msra.mxu1 %v195_v28  ;;  %v175_v39 = vor.u32 %v199_v36, %v174_v35  ;;  %v179_v42 = vor.u32 %v198_v37, %v176_v40  ;;  %v205_v60 = vld [vmem:[%s308_s1] ss:$0 sm:$0xff] }
   0x7   :  { %v208_v7 = vpop.eup %207  ;;  %v97_v6 = vld [vmem:[%s311_s4] sm:$0x3] }
   0x8   :  { %v34_v8 = vmul.f32 48.0, %v208_v7  ;;  %vm38_vm2 = vweird.f32 %v208_v7 }
   0x9   :  { %142 = vmatpush.bf16.msra.mxu0 %v183_v32 }
   0xa   :  { %v35_v9 = vsub.f32 1.0, %v34_v8  ;;  %156 = vmatpush.bf16.msra.mxu1 %v187_v34  ;;  %v100_v8 = vperm.slane %v97_v6, 1 }
   0xc   :  { %v36_v10 = vmul.f32 %v208_v7, %v35_v9 }
   0xd   :  { %31 = vadd.xlane.f32.xlu0 %v30_v5  ;;  %143 = vmatpush.bf16.msra.mxu0 %v175_v39 }
   0xe   :  { %v37_v11 = vadd.f32 %v208_v7, %v36_v10  ;;  %157 = vmatpush.bf16.msra.mxu1 %v179_v42 }
  0x10   :  { %v39_v12 = vsel %vm38_vm2, %v208_v7, %v37_v11  ;;  %v99_v7 = vperm.slane %v97_v6, 0 }
  0x78   :  { %v28_v13 = vpop.xlane.xlu0 %27 }
  0x79   :  { %v40_v14 = vmul.f32 %v39_v12, %v28_v13 }
  0x7b   :  { %v42_v15 = vsub.f32 %v23_v1, %v40_v14  ;;  %v206_v1 = vld [vmem:[%s309_s2] ss:$0 sm:$0xff] }
  0x7d   :  { %v44_v16 = vmul.f32 %v42_v15, %v42_v15 }
  0x7f   :  { %v46_v17 = vsel %vm25_vm0, %v44_v16, 0.0 }
  0x80   :  { %47 = vadd.xlane.f32.xlu1 %v46_v17  ;;  %v32_v18 = vpop.xlane.xlu0 %31 }
  0x81   :  { %v41_v19 = vmul.f32 %v39_v12, %v32_v18 }
  0x83   :  { %v43_v20 = vsub.f32 %v24_v4, %v41_v19 }
  0x85   :  { %v45_v21 = vmul.f32 %v43_v20, %v43_v20 }
  0x87   :  { %v49_v22 = vsel %vm29_vm1, %v45_v21, 0.0 }
  0x88   :  { %50 = vadd.xlane.f32.xlu1 %v49_v22 }
  0xf3   :  { %v48_v38 = vpop.xlane.xlu1 %47 }
  0xf4   :  { %v52_v41 = vmul.f32 %v48_v38, %v39_v12 }
  0xf6   :  { %v54_v43 = vadd.f32 1e-06, %v52_v41 }
  0xf8   :  { %209 = vrsqrt.f32 %v54_v43  ;;  %vm62_vm4 = vweird.f32 %v54_v43 }
  0xfb   :  { %v51_v44 = vpop.xlane.xlu1 %50 }
  0xfc   :  { %v53_v45 = vmul.f32 %v51_v44, %v39_v12 }
  0xfe   :  { %v210_v46 = vpop.eup %209  ;;  %v55_v47 = vadd.f32 1e-06, %v53_v45 }
  0xff   :  { %v57_v48 = vmul.f32 %v210_v46, %v54_v43  ;;  %vm63_vm3 = vweird.f32 %v210_v46 }
 0x100   :  { %211 = vrsqrt.f32 %v55_v47  ;;  %vm64_vm5 = vmor %vm62_vm4, %vm63_vm3  ;;  %vm72_vm7 = vweird.f32 %v55_v47 }
 0x101   :  { %v58_v49 = vmul.f32 %v210_v46, %v57_v48 }
 0x103   :  { %v59_v50 = vmul.f32 0.5, %v58_v49 }
 0x105   :  { %v60_v51 = vsub.f32 1.5, %v59_v50 }
 0x106   :  { %v212_v52 = vpop.eup %211 }
 0x107   :  { %v61_v53 = vmul.f32 %v210_v46, %v60_v51  ;;  %v67_v54 = vmul.f32 %v212_v52, %v55_v47  ;;  %vm73_vm6 = vweird.f32 %v212_v52 }
 0x108   :  { %vm74_vm8 = vmor %vm72_vm7, %vm73_vm6 }
 0x109   :  { %v68_v55 = vmul.f32 %v212_v52, %v67_v54  ;;  %v65_v56 = vsel %vm64_vm5, %v210_v46, %v61_v53 }
 0x10a   :  { %v76_v59 = vmul.f32 %v65_v56, %v42_v15 }
 0x10b   :  { %v69_v57 = vmul.f32 0.5, %v68_v55 }
 0x10c   :  { %v82_v0 = vmul.f32 %v205_v60, %v76_v59 }
 0x10d   :  { %v70_v58 = vsub.f32 1.5, %v69_v57 }
 0x10e   :  { %v88_v3 = vadd.f32 %v206_v1, %v82_v0 }
 0x10f   :  { %v71_v61 = vmul.f32 %v212_v52, %v70_v58 }
 0x111   :  { %v75_v62 = vsel %vm74_vm8, %v212_v52, %v71_v61 }
 0x112   :  { %v77_v63 = vmul.f32 %v75_v62, %v43_v20 }
 0x114   :  { %v83_v2 = vmul.f32 %v205_v60, %v77_v63 }
 0x116   :  { %v89_v4 = vadd.f32 %v206_v1, %v83_v2 }
 0x118   :  { %v90_v5 = vpack.c.bf16 %v89_v4, %v88_v3 }
 0x11a   :  { %196 = vmatmul.msk.bf16.vlgmr.msra.gmra.mxu0 %vm25_vm0, %v90_v5  ;;  %197 = vmatmul.msk.bf16.vlgmr.msra.gmra.mxu1 %vm25_vm0, %v90_v5 }
 0x197   :  { %v145_v9 = vpop.f32.mrf.mxu0  ;;  %v159_v10 = vpop.f32.mrf.mxu1 }
 0x198   :  { %v146_v11 = vadd.f32 %v145_v9, %v99_v7  ;;  %v160_v12 = vadd.f32 %v159_v10, %v100_v8 }
 0x19a   :  { %v164_v13 = vpack.c.bf16 %v160_v12, %v146_v11 }
 0x19c   :  { %166 = vst [vmem:[%s312_s5] sm:$0xff] %v164_v13 }
 0x19f   :  { %v147_v14 = vpop.f32.mrf.mxu0  ;;  %v161_v15 = vpop.f32.mrf.mxu1 }
 0x1a0   :  { %v148_v16 = vadd.f32 %v147_v14, %v99_v7  ;;  %v162_v17 = vadd.f32 %v161_v15, %v100_v8 }
 0x1a2   :  { %v165_v18 = vpack.c.bf16 %v162_v17, %v148_v16 }
 0x1a4   :  { %167 = vst [vmem:[%s312_s5 + $0x8] sm:$0x11] %v165_v18 }

// kernel: eva_x_forward.18
= control target key start
LH: loop header
LB: loop body
LE: loop exit
PB: predicated region body
PF: predicated region fallthrough
CT: control target
= control target key end

     0   :  { %vm64_vm8 = vcmask 1041408   ;;  %v151_v37 = vmov 128.0   ;;  %s192_s0 = inlined_call_operand.vmem [shape: bf16[10,256], index: 0, kind: input, shape index: {}]   ;;  %s193_s1 = inlined_call_operand.vmem [shape: f32[1,128], index: 1, kind: input, shape index: {}]   ;;  %s194_s2 = inlined_call_operand.vmem [shape: f32[1,128], index: 2, kind: input, shape index: {}]   ;;  %s195_s3 = inlined_call_operand.vmem [shape: bf16[10,128], index: 3, kind: output, shape index: {}]  }
   0x1   :  { %v15_v0 = vld [vmem:[%s192_s0 + $0x8] sm:$0x11]  ;;  %v14_v1 = vld [vmem:[%s192_s0] sm:$0xff] }
   0x2   :  { %v18_v2 = vunpack.c.l.bf16 %v15_v0  ;;  %v16_v3 = vunpack.c.l.bf16 %v14_v1  ;;  %v19_v25 = vunpack.c.h.bf16 %v15_v0  ;;  %v17_v34 = vunpack.c.h.bf16 %v14_v1 }
   0x4   :  { %v133_v4 = vmul.f32 -1.442695, %v18_v2  ;;  %v132_v5 = vmul.f32 -1.442695, %v16_v3 }
   0x6   :  { %137 = vpow2.f32 %v133_v4 }
   0x7   :  { %139 = vpow2.f32 %v132_v5 }
   0xc   :  { %v138_v6 = vpop.eup %137 }
   0xd   :  { %v140_v7 = vpop.eup %139  ;;  %v27_v8 = vadd.f32 1.0, %v138_v6  ;;  %v136_v6 = vld [vmem:[%s194_s2] ss:$0 sm:$0xff] }
   0xe   :  { %v26_v9 = vadd.f32 1.0, %v140_v7 }
   0xf   :  { %141 = vrcp.f32 %v27_v8  ;;  %v54_v13 = vand.u32 2147483648, %v27_v8  ;;  %vm48_vm0 = vweird.f32 %v27_v8  ;;  %v52_v16 = vand.u32 2147483647, %v27_v8 }
  0x10   :  { %143 = vrcp.f32 %v26_v9  ;;  %vm33_vm2 = vweird.f32 %v26_v9  ;;  %v39_v19 = vand.u32 2147483648, %v26_v9  ;;  %v37_v22 = vand.u32 2147483647, %v26_v9 }
  0x11   :  { %v55_v20 = vor.u32 1.1754944e-38, %v54_v13  ;;  %vm53_vm5 = vcmp.eq.f32.partialorder %v52_v16, 8.507059e+37  ;;  %145 = vrcp.f32 %v151_v37 }
  0x12   :  { %v40_v27 = vor.u32 1.1754944e-38, %v39_v19  ;;  %vm38_vm7 = vcmp.eq.f32.partialorder %v37_v22, 8.507059e+37 }
  0x15   :  { %v142_v10 = vpop.eup %141 }
  0x16   :  { %v144_v11 = vpop.eup %143  ;;  %v44_v12 = vmul.f32 %v142_v10, %v27_v8  ;;  %vm49_vm1 = vweird.f32 %v142_v10 }
  0x17   :  { %v29_v14 = vmul.f32 %v144_v11, %v26_v9  ;;  %vm34_vm3 = vweird.f32 %v144_v11  ;;  %vm50_vm4 = vmor %vm48_vm0, %vm49_vm1  ;;  %v146_v38 = vpop.eup %145 }
  0x18   :  { %v45_v15 = vsub.f32 1.0, %v44_v12  ;;  %vm35_vm6 = vmor %vm33_vm2, %vm34_vm3  ;;  %v69_v39 = vmul.f32 128.0, %v146_v38  ;;  %vm73_vm9 = vweird.f32 %v146_v38 }
  0x19   :  { %v30_v17 = vsub.f32 1.0, %v29_v14 }
  0x1a   :  { %v46_v18 = vmul.f32 %v142_v10, %v45_v15  ;;  %v70_v40 = vsub.f32 1.0, %v69_v39 }
  0x1b   :  { %v31_v21 = vmul.f32 %v144_v11, %v30_v17 }
  0x1c   :  { %v47_v23 = vadd.f32 %v142_v10, %v46_v18  ;;  %v71_v41 = vmul.f32 %v146_v38, %v70_v40 }
  0x1d   :  { %v32_v24 = vadd.f32 %v144_v11, %v31_v21 }
  0x1e   :  { %v51_v26 = vsel %vm50_vm4, %v142_v10, %v47_v23  ;;  %v72_v43 = vadd.f32 %v146_v38, %v71_v41 }
  0x1f   :  { %v56_v28 = vsel %vm53_vm5, %v55_v20, %v51_v26  ;;  %v36_v29 = vsel %vm35_vm6, %v144_v11, %v32_v24 }
  0x20   :  { %v59_v30 = vmul.f32 %v56_v28, %v18_v2  ;;  %v41_v32 = vsel %vm38_vm7, %v40_v27, %v36_v29  ;;  %v74_v44 = vsel %vm73_vm9, %v146_v38, %v72_v43 }
  0x21   :  { %v58_v35 = vmul.f32 %v41_v32, %v16_v3  ;;  %v135_v3 = vld [vmem:[%s193_s1] ss:$0 sm:$0xff] }
  0x22   :  { %v61_v31 = vmul.f32 %v59_v30, %v19_v25 }
  0x23   :  { %v60_v36 = vmul.f32 %v58_v35, %v17_v34 }
  0x24   :  { %v65_v33 = vsel %vm64_vm8, %v61_v31, 0.0 }
  0x25   :  { %66 = vadd.xlane.f32.xlu0 %v65_v33 }
  0x2d   :  { %62 = vadd.xlane.f32.xlu0 %v60_v36 }
  0x98   :  { %v67_v42 = vpop.xlane.xlu0 %66 }
  0x99   :  { %v76_v47 = vmul.f32 %v74_v44, %v67_v42 }
  0x9b   :  { %v78_v50 = vsub.f32 %v61_v31, %v76_v47 }
  0x9d   :  { %v80_v51 = vmul.f32 %v78_v50, %v78_v50 }
  0x9f   :  { %v83_v52 = vsel %vm64_vm8, %v80_v51, 0.0 }
  0xa0   :  { %v63_v45 = vpop.xlane.xlu0 %62 }
  0xa1   :  { %v75_v46 = vmul.f32 %v74_v44, %v63_v45 }
  0xa3   :  { %v77_v48 = vsub.f32 %v60_v36, %v75_v46 }
  0xa5   :  { %v79_v49 = vmul.f32 %v77_v48, %v77_v48 }
  0xa7   :  { %81 = vadd.xlane.f32.xlu1 %v79_v49 }
  0xaf   :  { %84 = vadd.xlane.f32.xlu1 %v83_v52 }
 0x11a   :  { %v82_v53 = vpop.xlane.xlu1 %81 }
 0x11b   :  { %v86_v54 = vmul.f32 %v82_v53, %v74_v44 }
 0x11d   :  { %v88_v55 = vadd.f32 1e-06, %v86_v54 }
 0x11f   :  { %147 = vrsqrt.f32 %v88_v55  ;;  %vm96_vm11 = vweird.f32 %v88_v55 }
 0x122   :  { %v85_v56 = vpop.xlane.xlu1 %84 }
 0x123   :  { %v87_v57 = vmul.f32 %v85_v56, %v74_v44 }
 0x125   :  { %v148_v58 = vpop.eup %147  ;;  %v89_v59 = vadd.f32 1e-06, %v87_v57 }
 0x126   :  { %v91_v60 = vmul.f32 %v148_v58, %v88_v55  ;;  %vm97_vm10 = vweird.f32 %v148_v58 }
 0x127   :  { %149 = vrsqrt.f32 %v89_v59  ;;  %vm98_vm12 = vmor %vm96_vm11, %vm97_vm10  ;;  %vm106_vm14 = vweird.f32 %v89_v59 }
 0x128   :  { %v92_v61 = vmul.f32 %v148_v58, %v91_v60 }
 0x12a   :  { %v93_v62 = vmul.f32 0.5, %v92_v61 }
 0x12c   :  { %v94_v63 = vsub.f32 1.5, %v93_v62 }
 0x12d   :  { %v150_v0 = vpop.eup %149 }
 0x12e   :  { %v95_v1 = vmul.f32 %v148_v58, %v94_v63  ;;  %v101_v2 = vmul.f32 %v150_v0, %v89_v59  ;;  %vm107_vm13 = vweird.f32 %v150_v0 }
 0x12f   :  { %vm108_vm15 = vmor %vm106_vm14, %vm107_vm13 }
 0x130   :  { %v99_v4 = vsel %vm98_vm12, %v148_v58, %v95_v1  ;;  %v102_v5 = vmul.f32 %v150_v0, %v101_v2 }
 0x131   :  { %v110_v7 = vmul.f32 %v99_v4, %v77_v48 }
 0x132   :  { %v103_v8 = vmul.f32 0.5, %v102_v5 }
 0x133   :  { %v116_v9 = vmul.f32 %v135_v3, %v110_v7 }
 0x134   :  { %v104_v10 = vsub.f32 1.5, %v103_v8 }
 0x135   :  { %v122_v11 = vadd.f32 %v136_v6, %v116_v9 }
 0x136   :  { %v105_v12 = vmul.f32 %v150_v0, %v104_v10 }
 0x137   :  { %v124_v13 = vpack.c.bf16 %v122_v11, %v122_v11 }
 0x138   :  { %v109_v14 = vsel %vm108_vm15, %v150_v0, %v105_v12 }
 0x139   :  { %126 = vst [vmem:[%s195_s3] sm:$0xf] %v124_v13  ;;  %v111_v15 = vmul.f32 %v109_v14, %v78_v50 }
 0x13b   :  { %v117_v16 = vmul.f32 %v135_v3, %v111_v15 }
 0x13d   :  { %v123_v17 = vadd.f32 %v136_v6, %v117_v16 }
 0x13f   :  { %v125_v18 = vpack.c.bf16 %v123_v17, %v123_v17 }
 0x141   :  { %127 = vst [vmem:[%s195_s3 + $0x4] sm:$0x1] %v125_v18 }

</bundles_post_ra>
